<compile_context>
chip_gen: v6e
topology: v6e:2x2x1
jax: 0.10.0
libtpu: 0.0.40
codegen_flags: <defaults>
</compile_context>

<pallas_src>
import functools

import jax
import jax.numpy as jnp
from jax.experimental import pallas as pl
from jax.experimental.pallas import tpu as pltpu


# ----------------------------------------------------------------- kernel ----
def mel_style_encoder_kernel(
    x_ref,                                     # (T, n_mel) bf16
    w1_ref, b1_ref, w2_ref, b2_ref,            # spectral linears
    cw1_ref, cb1_ref, cw2_ref, cb2_ref,        # Conv1dGLU x2 (cw: (K*H, 2H) bf16)
    wqkv_ref, bqkv_ref,                        # fused QKV ( (H,3H) bf16 / (1,3H) f32 )
    wo_ref, bo_ref,                            # per-head out proj (n_head, d_k, H) bf16
    wfc_ref, bfc_ref,                          # final fc (H, out_dim) bf16
    out_ref,                                   # (1, out_dim) f32
    q_scr, k_scr, v_scr,                       # (n_head, T, d_k) bf16 scratch
    attn_scr,                                  # (T, H) f32 scratch (attn accumulator)
    *, n_head, d_k, kernel_size, tq,
):
    bf16 = jnp.bfloat16
    f32 = jnp.float32
    T = x_ref.shape[0]
    H = w1_ref.shape[1]
    K = kernel_size
    P = (K - 1) // 2
    n_q = T // tq

    def mm(a, w_ref):                          # bf16 MXU matmul, f32 accumulation
        return jnp.dot(a.astype(bf16), w_ref[...], preferred_element_type=f32)

    def mish(v):
        # mish(x) = x * tanh(softplus(x)) = x * w/(w+2), w = u*(u+2), u = exp(x)
        # clamp avoids f32 overflow of u^2; for x > 20 mish(x) == x to f32 precision.
        u = jnp.exp(jnp.minimum(v, 20.0))
        w = u * (u + 2.0)
        return v * w * pl.reciprocal(w + 2.0, approx=True)

    # ---- spectral: Linear -> Mish -> (Dropout) -> Linear -> Mish -> (Dropout)
    h = mish(mm(x_ref[...], w1_ref) + b1_ref[...])
    h = mish(mm(h, w2_ref) + b2_ref[...])

    # ---- temporal: two Conv1dGLU blocks (same-padded conv1d, GLU, residual)
    def conv1d_glu(h, cw_ref, cb_ref):
        zeros = jnp.zeros((P, H), dtype=h.dtype)
        h_pad = jnp.concatenate([zeros, h, zeros], axis=0).astype(bf16)   # (T+K-1, H)
        if H % 128 == 0:
            # production path: single im2col matmul (T, K*H) x (K*H, 2H);
            # lane offsets k*H are 128-aligned so the concat is relayout-free.
            h_win = jnp.concatenate([h_pad[k:k + T, :] for k in range(K)], axis=1)
            y = jnp.dot(h_win, cw_ref[...], preferred_element_type=f32)
        else:
            # fallback for lane-unaligned H (toy shapes): K shifted matmuls
            # accumulated in f32, avoiding the unaligned (T, K*H) lane concat.
            y = jnp.zeros((T, 2 * H), dtype=f32)
            for k in range(K):
                y = y + jnp.dot(h_pad[k:k + T, :], cw_ref[k * H:(k + 1) * H, :],
                                preferred_element_type=f32)
        y = y + cb_ref[...]
        a = y[:, :H]
        g = y[:, H:]
        return h + a * jax.nn.sigmoid(g)                                  # residual + GLU

    h = conv1d_glu(h, cw1_ref, cb1_ref)
    h = conv1d_glu(h, cw2_ref, cb2_ref)

    # ---- multi-head self-attention (mask=None), residual.
    # Fused QKV projection; temperature already folded into the Q slice.
    qkv = mm(h, wqkv_ref) + bqkv_ref[...]                                 # (T, 3H) f32

    # Stash per-head Q/K/V in bf16 scratch (static small copies).
    for hd in range(n_head):
        s0 = hd * d_k
        q_scr[hd] = qkv[:, s0:s0 + d_k].astype(bf16)
        k_scr[hd] = qkv[:, H + s0:H + s0 + d_k].astype(bf16)
        v_scr[hd] = qkv[:, 2 * H + s0:2 * H + s0 + d_k].astype(bf16)

    # Accumulator starts at residual + output-projection bias.
    attn_scr[...] = h + bo_ref[...]

    def head_body(hd, carry):
        kh = k_scr[hd]                                                    # (T, d_k) bf16
        vh = v_scr[hd]
        woh = wo_ref[hd]                                                  # (d_k, H) bf16

        def q_body(qi, c):
            r0 = pl.multiple_of(qi * tq, tq)
            qb = q_scr[hd, pl.ds(r0, tq), :]                              # (tq, d_k) bf16
            # scores = qb @ kh.T (temperature pre-folded into q)
            s = jax.lax.dot_general(qb, kh, (((1,), (1,)), ((), ())),
                                    preferred_element_type=f32)           # (tq, T)
            s = s - jnp.max(s, axis=-1, keepdims=True)
            p = jnp.exp(s)
            p = p * pl.reciprocal(jnp.sum(p, axis=-1, keepdims=True), approx=True)
            ho = jnp.dot(p.astype(bf16), vh, preferred_element_type=f32)  # (tq, d_k)
            attn_scr[pl.ds(r0, tq), :] += jnp.dot(ho.astype(bf16), woh,
                                                  preferred_element_type=f32)
            return c

        return jax.lax.fori_loop(0, n_q, q_body, carry)

    jax.lax.fori_loop(0, n_head, head_body, 0)

    # ---- temporal average pool folded into fc:
    #      mean_t(h @ Wfc + bfc) == mean_t(h) @ Wfc + bfc
    h_mean = jnp.mean(attn_scr[...], axis=0, keepdims=True)               # (1, H)
    out_ref[...] = mm(h_mean, wfc_ref) + bfc_ref[...]                     # (1, out_dim)


# ---------------------------------------------------------------- wrapper ----
def _pick_query_tile(T, max_tile=512):
    if T <= max_tile:
        return T
    for cand in range(max_tile, 7, -8):
        if T % cand == 0:
            return cand
    return T   # TODO(synk): pad T for ragged query tiling


def mel_style_encoder(x, params, *, n_head, kernel_size):
    B, n_mel, T = x.shape
    H = params["w1"].shape[0]
    out_dim = params["wfc"].shape[0]
    d_k = H // n_head
    K = kernel_size
    inv_temp = 1.0 / (float(H) ** 0.5)
    bf16 = jnp.bfloat16

    # One-time layout / algebra plumbing (outside the kernel):
    x_t = jnp.transpose(x, (0, 2, 1)).astype(bf16)        # (B, T, n_mel) bf16
    w1_t = params["w1"].T.astype(bf16)                    # (n_mel, H)
    w2_t = params["w2"].T.astype(bf16)                    # (H, H)
    cw1_t = params["cw1"].reshape(K * H, 2 * H).astype(bf16)
    cw2_t = params["cw2"].reshape(K * H, 2 * H).astype(bf16)
    # fused QKV weight/bias; attention temperature folded into the Q slice
    wqkv = jnp.concatenate(
        [params["wq"].T * inv_temp, params["wk"].T, params["wv"].T], axis=1
    ).astype(bf16)                                        # (H, 3H)
    bqkv = jnp.concatenate(
        [params["bq"] * inv_temp, params["bk"], params["bv"]], axis=1)   # (1, 3H)
    wo_h = params["wo"].T.reshape(n_head, d_k, H).astype(bf16)           # per-head proj
    wfc_t = params["wfc"].T.astype(bf16)                  # (H, out_dim)

    flat = [
        w1_t, params["b1"], w2_t, params["b2"],
        cw1_t, params["cb1"], cw2_t, params["cb2"],
        wqkv, bqkv, wo_h, params["bo"],
        wfc_t, params["bfc"],
    ]

    tq = _pick_query_tile(T)

    def full_spec(a):
        nd = a.ndim
        return pl.BlockSpec(a.shape, lambda b, _nd=nd: (0,) * _nd)

    # Size scoped VMEM from the actual buffers (with headroom), capped at 64 MiB
    # so the same request is valid on v7x's smaller physical VMEM.
    def _nbytes(a):
        return int(a.size) * a.dtype.itemsize
    weight_bytes = sum(_nbytes(a) for a in flat)
    act_bytes = (
        T * n_mel * 2 * 2                 # x block, double-buffered bf16
        + T * K * H * 2                   # im2col window (bf16)
        + T * 2 * H * 4 * 2               # conv pre-activation / GLU temps (f32)
        + T * 3 * H * 4                   # fused qkv (f32)
        + 3 * n_head * T * d_k * 2        # per-head q/k/v scratch (bf16)
        + T * H * 4 * 4                   # h / residual / attention accumulator
        + tq * T * 4 * 3                  # (tq, T) scores + softmax temporaries
    )
    vmem_limit = int(min(64 << 20,
                         max(32 << 20, 2 * weight_bytes + 2 * act_bytes + (4 << 20))))

    kernel = functools.partial(
        mel_style_encoder_kernel,
        n_head=n_head, d_k=d_k, kernel_size=K, tq=tq,
    )

    out = pl.pallas_call(
        kernel,
        out_shape=jax.ShapeDtypeStruct((B, 1, out_dim), jnp.float32),
        grid_spec=pltpu.PrefetchScalarGridSpec(
            num_scalar_prefetch=0,
            grid=(B,),
            in_specs=[pl.BlockSpec((None, T, n_mel), lambda b: (b, 0, 0))]
                     + [full_spec(a) for a in flat],
            out_specs=pl.BlockSpec((None, 1, out_dim), lambda b: (b, 0, 0)),
            scratch_shapes=[
                pltpu.VMEM((n_head, T, d_k), bf16),       # q
                pltpu.VMEM((n_head, T, d_k), bf16),       # k
                pltpu.VMEM((n_head, T, d_k), bf16),       # v
                pltpu.VMEM((T, H), jnp.float32),          # attn accumulator
            ],
        ),
        compiler_params=pltpu.CompilerParams(
            dimension_semantics=("parallel",),
            vmem_limit_bytes=vmem_limit,
        ),
    )(x_t, *flat)
    return out[:, 0, :, None]                             # (B, out_dim, 1)


# ------------------------------------------------------- pure-JAX reference --
def mel_style_encoder_ref(x, p, *, n_head, kernel_size):
    B, n_mel, T = x.shape
    H = p["w1"].shape[0]
    d_k = H // n_head
    P = (kernel_size - 1) // 2

    def mish(v):
        return v * jnp.tanh(jax.nn.softplus(v))

    h = jnp.transpose(x, (0, 2, 1))                       # (B, T, n_mel)
    h = mish(h @ p["w1"].T + p["b1"])
    h = mish(h @ p["w2"].T + p["b2"])

    def conv_glu(h, cw, cb):
        hp = jnp.pad(h, ((0, 0), (P, P), (0, 0)))
        y = sum(hp[:, k:k + T, :] @ cw[k] for k in range(kernel_size)) + cb
        a, g = y[..., :H], y[..., H:]
        return h + a * jax.nn.sigmoid(g)

    h = conv_glu(h, p["cw1"], p["cb1"])
    h = conv_glu(h, p["cw2"], p["cb2"])

    residual = h
    q = h @ p["wq"].T + p["bq"]
    k = h @ p["wk"].T + p["bk"]
    v = h @ p["wv"].T + p["bv"]
    temp = float(H) ** 0.5
    outs = []
    for hd in range(n_head):
        qh = q[..., hd * d_k:(hd + 1) * d_k]
        kh = k[..., hd * d_k:(hd + 1) * d_k]
        vh = v[..., hd * d_k:(hd + 1) * d_k]
        s = jnp.einsum("btd,bsd->bts", qh, kh) / temp
        a = jax.nn.softmax(s, axis=-1)
        outs.append(jnp.einsum("bts,bsd->btd", a, vh))
    attn = jnp.concatenate(outs, axis=-1)
    h = attn @ p["wo"].T + p["bo"] + residual

    y = h @ p["wfc"].T + p["bfc"]
    return jnp.mean(y, axis=1)[:, :, None]


# ------------------------------------------------------------------- main ----
if __name__ == "__main__":
    # Small shapes consistent with the module structure.
    B, T = 2, 16
    n_mel, H, out_dim = 16, 32, 64
    K, n_head = 5, 2

    key = jax.random.PRNGKey(0)
    ks = jax.random.split(key, 20)

    def rnd(k, shape, scale=0.1):
        return scale * jax.random.normal(k, shape, dtype=jnp.float32)

    # Conv1d weights stored as (K, Cin, Cout) so cw[k] == torch_weight[:, :, k].T
    params = {
        "w1": rnd(ks[0], (H, n_mel)),    "b1": rnd(ks[1], (1, H)),
        "w2": rnd(ks[2], (H, H)),        "b2": rnd(ks[3], (1, H)),
        "cw1": rnd(ks[4], (K, H, 2 * H)), "cb1": rnd(ks[5], (1, 2 * H)),
        "cw2": rnd(ks[6], (K, H, 2 * H)), "cb2": rnd(ks[7], (1, 2 * H)),
        "wq": rnd(ks[8], (H, H)),        "bq": rnd(ks[9], (1, H)),
        "wk": rnd(ks[10], (H, H)),       "bk": rnd(ks[11], (1, H)),
        "wv": rnd(ks[12], (H, H)),       "bv": rnd(ks[13], (1, H)),
        "wo": rnd(ks[14], (H, H)),       "bo": rnd(ks[15], (1, H)),
        "wfc": rnd(ks[16], (out_dim, H)), "bfc": rnd(ks[17], (1, out_dim)),
    }

    x = jax.random.normal(ks[18], (B, n_mel, T), dtype=jnp.float32)

    out = mel_style_encoder(x, params, n_head=n_head, kernel_size=K)
    out = jax.block_until_ready(out)

    ref = mel_style_encoder_ref(x, params, n_head=n_head, kernel_size=K)
    assert out.shape == (B, out_dim, 1), out.shape
    # bf16 MXU operands + approx reciprocals -> looser tolerance than pure f32.
    assert jnp.allclose(out, ref, atol=2e-2, rtol=2e-2), float(jnp.max(jnp.abs(out - ref)))

    print("KERNEL_OK")
</pallas_src>

<mosaic_0001>
module attributes {stable_mosaic.version = 11 : i64} {
  func.func @mel_style_encoder_kernel(%arg0: i32, %arg1: memref<1x16x16xbf16, #tpu.memory_space<vmem>>, %arg2: memref<16x32xbf16, #tpu.memory_space<vmem>>, %arg3: memref<1x32xf32, #tpu.memory_space<vmem>>, %arg4: memref<32x32xbf16, #tpu.memory_space<vmem>>, %arg5: memref<1x32xf32, #tpu.memory_space<vmem>>, %arg6: memref<160x64xbf16, #tpu.memory_space<vmem>>, %arg7: memref<1x64xf32, #tpu.memory_space<vmem>>, %arg8: memref<160x64xbf16, #tpu.memory_space<vmem>>, %arg9: memref<1x64xf32, #tpu.memory_space<vmem>>, %arg10: memref<32x96xbf16, #tpu.memory_space<vmem>>, %arg11: memref<1x96xf32, #tpu.memory_space<vmem>>, %arg12: memref<2x16x32xbf16, #tpu.memory_space<vmem>>, %arg13: memref<1x32xf32, #tpu.memory_space<vmem>>, %arg14: memref<32x64xbf16, #tpu.memory_space<vmem>>, %arg15: memref<1x64xf32, #tpu.memory_space<vmem>>, %arg16: memref<1x1x64xf32, #tpu.memory_space<vmem>>, %arg17: memref<2x16x16xbf16, #tpu.memory_space<vmem>>, %arg18: memref<2x16x16xbf16, #tpu.memory_space<vmem>>, %arg19: memref<2x16x16xbf16, #tpu.memory_space<vmem>>, %arg20: memref<16x32xf32, #tpu.memory_space<vmem>>) attributes {dimension_semantics = [#tpu.dimension_semantics<parallel>], iteration_bounds = array<i64: 2>, scalar_prefetch = 0 : i64, scratch_operands = 4 : i64, tpu.core_type = #tpu.core_type<tc>, window_params = [{transform_indices = @transform_0, window_bounds = array<i64: 1, 16, 16>}, {pipeline_mode = #tpu.pipeline_mode<synchronous>, transform_indices = @transform_1, window_bounds = array<i64: 16, 32>}, {pipeline_mode = #tpu.pipeline_mode<synchronous>, transform_indices = @transform_2, window_bounds = array<i64: 1, 32>}, {pipeline_mode = #tpu.pipeline_mode<synchronous>, transform_indices = @transform_3, window_bounds = array<i64: 32, 32>}, {pipeline_mode = #tpu.pipeline_mode<synchronous>, transform_indices = @transform_4, window_bounds = array<i64: 1, 32>}, {pipeline_mode = #tpu.pipeline_mode<synchronous>, transform_indices = @transform_5, window_bounds = array<i64: 160, 64>}, {pipeline_mode = #tpu.pipeline_mode<synchronous>, transform_indices = @transform_6, window_bounds = array<i64: 1, 64>}, {pipeline_mode = #tpu.pipeline_mode<synchronous>, transform_indices = @transform_7, window_bounds = array<i64: 160, 64>}, {pipeline_mode = #tpu.pipeline_mode<synchronous>, transform_indices = @transform_8, window_bounds = array<i64: 1, 64>}, {pipeline_mode = #tpu.pipeline_mode<synchronous>, transform_indices = @transform_9, window_bounds = array<i64: 32, 96>}, {pipeline_mode = #tpu.pipeline_mode<synchronous>, transform_indices = @transform_10, window_bounds = array<i64: 1, 96>}, {pipeline_mode = #tpu.pipeline_mode<synchronous>, transform_indices = @transform_11, window_bounds = array<i64: 2, 16, 32>}, {pipeline_mode = #tpu.pipeline_mode<synchronous>, transform_indices = @transform_12, window_bounds = array<i64: 1, 32>}, {pipeline_mode = #tpu.pipeline_mode<synchronous>, transform_indices = @transform_13, window_bounds = array<i64: 32, 64>}, {pipeline_mode = #tpu.pipeline_mode<synchronous>, transform_indices = @transform_14, window_bounds = array<i64: 1, 64>}, {transform_indices = @transform_15, window_bounds = array<i64: 1, 1, 64>}]} {
    %c0 = arith.constant 0 : index
    %c0_0 = arith.constant 0 : index
    %c0_1 = arith.constant 0 : index
    %0 = vector.load %arg1[%c0, %c0_0, %c0_1] : memref<1x16x16xbf16, #tpu.memory_space<vmem>>, vector<1x16x16xbf16>
    %1 = vector.shape_cast %0 : vector<1x16x16xbf16> to vector<16x16xbf16>
    %c0_2 = arith.constant 0 : index
    %c0_3 = arith.constant 0 : index
    %2 = vector.load %arg2[%c0_2, %c0_3] : memref<16x32xbf16, #tpu.memory_space<vmem>>, vector<16x32xbf16>
    %cst = arith.constant dense<0.000000e+00> : vector<16x32xf32>
    %3 = tpu.matmul %1, %2, %cst {dimension_numbers = #tpu.dot_dimension_numbers<[1], [0], [0], [1], [0, 0, 1, 1], [], []>} : vector<16x16xbf16>, vector<16x32xbf16>, vector<16x32xf32> -> vector<16x32xf32>
    %c0_4 = arith.constant 0 : index
    %c0_5 = arith.constant 0 : index
    %4 = vector.load %arg3[%c0_4, %c0_5] : memref<1x32xf32, #tpu.memory_space<vmem>>, vector<1x32xf32>
    %5 = vector.broadcast %4 : vector<1x32xf32> to vector<16x32xf32>
    %6 = arith.addf %3, %5 : vector<16x32xf32>
    %cst_6 = arith.constant 2.000000e+01 : f32
    %7 = vector.broadcast %cst_6 : f32 to vector<16x32xf32>
    %8 = arith.minimumf %6, %7 : vector<16x32xf32>
    %9 = math.exp %8 : vector<16x32xf32>
    %cst_7 = arith.constant 2.000000e+00 : f32
    %10 = vector.broadcast %cst_7 : f32 to vector<16x32xf32>
    %11 = arith.addf %9, %10 : vector<16x32xf32>
    %12 = arith.mulf %9, %11 : vector<16x32xf32>
    %13 = arith.mulf %6, %12 : vector<16x32xf32>
    %cst_8 = arith.constant 2.000000e+00 : f32
    %14 = vector.broadcast %cst_8 : f32 to vector<16x32xf32>
    %15 = arith.addf %12, %14 : vector<16x32xf32>
    %16 = tpu.reciprocal %15 {approx = true} : vector<16x32xf32> -> vector<16x32xf32>
    %17 = arith.mulf %13, %16 : vector<16x32xf32>
    %18 = arith.truncf %17 : vector<16x32xf32> to vector<16x32xbf16>
    %c0_9 = arith.constant 0 : index
    %c0_10 = arith.constant 0 : index
    %19 = vector.load %arg4[%c0_9, %c0_10] : memref<32x32xbf16, #tpu.memory_space<vmem>>, vector<32x32xbf16>
    %cst_11 = arith.constant dense<0.000000e+00> : vector<16x32xf32>
    %20 = tpu.matmul %18, %19, %cst_11 {dimension_numbers = #tpu.dot_dimension_numbers<[1], [0], [0], [1], [0, 0, 1, 1], [], []>} : vector<16x32xbf16>, vector<32x32xbf16>, vector<16x32xf32> -> vector<16x32xf32>
    %c0_12 = arith.constant 0 : index
    %c0_13 = arith.constant 0 : index
    %21 = vector.load %arg5[%c0_12, %c0_13] : memref<1x32xf32, #tpu.memory_space<vmem>>, vector<1x32xf32>
    %22 = vector.broadcast %21 : vector<1x32xf32> to vector<16x32xf32>
    %23 = arith.addf %20, %22 : vector<16x32xf32>
    %cst_14 = arith.constant 2.000000e+01 : f32
    %24 = vector.broadcast %cst_14 : f32 to vector<16x32xf32>
    %25 = arith.minimumf %23, %24 : vector<16x32xf32>
    %26 = math.exp %25 : vector<16x32xf32>
    %cst_15 = arith.constant 2.000000e+00 : f32
    %27 = vector.broadcast %cst_15 : f32 to vector<16x32xf32>
    %28 = arith.addf %26, %27 : vector<16x32xf32>
    %29 = arith.mulf %26, %28 : vector<16x32xf32>
    %30 = arith.mulf %23, %29 : vector<16x32xf32>
    %cst_16 = arith.constant 2.000000e+00 : f32
    %31 = vector.broadcast %cst_16 : f32 to vector<16x32xf32>
    %32 = arith.addf %29, %31 : vector<16x32xf32>
    %33 = tpu.reciprocal %32 {approx = true} : vector<16x32xf32> -> vector<16x32xf32>
    %34 = arith.mulf %30, %33 : vector<16x32xf32>
    %cst_17 = arith.constant 0.000000e+00 : f32
    %35 = vector.broadcast %cst_17 : f32 to vector<2x32xf32>
    %36 = tpu.concatenate %35, %34, %35 in 0 : vector<2x32xf32>, vector<16x32xf32>, vector<2x32xf32> -> vector<20x32xf32>
    %37 = arith.truncf %36 : vector<20x32xf32> to vector<20x32xbf16>
    %cst_18 = arith.constant 0.000000e+00 : f32
    %38 = vector.broadcast %cst_18 : f32 to vector<16x64xf32>
    %39 = vector.extract_strided_slice %37 {offsets = [0, 0], sizes = [16, 32], strides = [1, 1]} : vector<20x32xbf16> to vector<16x32xbf16>
    %c0_19 = arith.constant 0 : index
    %c0_20 = arith.constant 0 : index
    %40 = vector.load %arg6[%c0_19, %c0_20] : memref<160x64xbf16, #tpu.memory_space<vmem>>, vector<32x64xbf16>
    %cst_21 = arith.constant dense<0.000000e+00> : vector<16x64xf32>
    %41 = tpu.matmul %39, %40, %cst_21 {dimension_numbers = #tpu.dot_dimension_numbers<[1], [0], [0], [1], [0, 0, 1, 1], [], []>} : vector<16x32xbf16>, vector<32x64xbf16>, vector<16x64xf32> -> vector<16x64xf32>
    %42 = arith.addf %38, %41 : vector<16x64xf32>
    %43 = vector.extract_strided_slice %37 {offsets = [1, 0], sizes = [16, 32], strides = [1, 1]} : vector<20x32xbf16> to vector<16x32xbf16>
    %c32 = arith.constant 32 : index
    %c0_22 = arith.constant 0 : index
    %44 = vector.load %arg6[%c32, %c0_22] : memref<160x64xbf16, #tpu.memory_space<vmem>>, vector<32x64xbf16>
    %cst_23 = arith.constant dense<0.000000e+00> : vector<16x64xf32>
    %45 = tpu.matmul %43, %44, %cst_23 {dimension_numbers = #tpu.dot_dimension_numbers<[1], [0], [0], [1], [0, 0, 1, 1], [], []>} : vector<16x32xbf16>, vector<32x64xbf16>, vector<16x64xf32> -> vector<16x64xf32>
    %46 = arith.addf %42, %45 : vector<16x64xf32>
    %47 = vector.extract_strided_slice %37 {offsets = [2, 0], sizes = [16, 32], strides = [1, 1]} : vector<20x32xbf16> to vector<16x32xbf16>
    %c64 = arith.constant 64 : index
    %c0_24 = arith.constant 0 : index
    %48 = vector.load %arg6[%c64, %c0_24] : memref<160x64xbf16, #tpu.memory_space<vmem>>, vector<32x64xbf16>
    %cst_25 = arith.constant dense<0.000000e+00> : vector<16x64xf32>
    %49 = tpu.matmul %47, %48, %cst_25 {dimension_numbers = #tpu.dot_dimension_numbers<[1], [0], [0], [1], [0, 0, 1, 1], [], []>} : vector<16x32xbf16>, vector<32x64xbf16>, vector<16x64xf32> -> vector<16x64xf32>
    %50 = arith.addf %46, %49 : vector<16x64xf32>
    %51 = vector.extract_strided_slice %37 {offsets = [3, 0], sizes = [16, 32], strides = [1, 1]} : vector<20x32xbf16> to vector<16x32xbf16>
    %c96 = arith.constant 96 : index
    %c0_26 = arith.constant 0 : index
    %52 = vector.load %arg6[%c96, %c0_26] : memref<160x64xbf16, #tpu.memory_space<vmem>>, vector<32x64xbf16>
    %cst_27 = arith.constant dense<0.000000e+00> : vector<16x64xf32>
    %53 = tpu.matmul %51, %52, %cst_27 {dimension_numbers = #tpu.dot_dimension_numbers<[1], [0], [0], [1], [0, 0, 1, 1], [], []>} : vector<16x32xbf16>, vector<32x64xbf16>, vector<16x64xf32> -> vector<16x64xf32>
    %54 = arith.addf %50, %53 : vector<16x64xf32>
    %55 = vector.extract_strided_slice %37 {offsets = [4, 0], sizes = [16, 32], strides = [1, 1]} : vector<20x32xbf16> to vector<16x32xbf16>
    %c128 = arith.constant 128 : index
    %c0_28 = arith.constant 0 : index
    %56 = vector.load %arg6[%c128, %c0_28] : memref<160x64xbf16, #tpu.memory_space<vmem>>, vector<32x64xbf16>
    %cst_29 = arith.constant dense<0.000000e+00> : vector<16x64xf32>
    %57 = tpu.matmul %55, %56, %cst_29 {dimension_numbers = #tpu.dot_dimension_numbers<[1], [0], [0], [1], [0, 0, 1, 1], [], []>} : vector<16x32xbf16>, vector<32x64xbf16>, vector<16x64xf32> -> vector<16x64xf32>
    %58 = arith.addf %54, %57 : vector<16x64xf32>
    %c0_30 = arith.constant 0 : index
    %c0_31 = arith.constant 0 : index
    %59 = vector.load %arg7[%c0_30, %c0_31] : memref<1x64xf32, #tpu.memory_space<vmem>>, vector<1x64xf32>
    %60 = vector.broadcast %59 : vector<1x64xf32> to vector<16x64xf32>
    %61 = arith.addf %58, %60 : vector<16x64xf32>
    %62 = vector.extract_strided_slice %61 {offsets = [0, 0], sizes = [16, 32], strides = [1, 1]} : vector<16x64xf32> to vector<16x32xf32>
    %63 = vector.extract_strided_slice %61 {offsets = [0, 32], sizes = [16, 32], strides = [1, 1]} : vector<16x64xf32> to vector<16x32xf32>
    %64 = arith.negf %63 : vector<16x32xf32>
    %65 = math.exp %64 : vector<16x32xf32>
    %cst_32 = arith.constant 1.000000e+00 : f32
    %66 = vector.broadcast %cst_32 : f32 to vector<16x32xf32>
    %67 = arith.addf %66, %65 : vector<16x32xf32>
    %68 = arith.divf %66, %67 : vector<16x32xf32>
    %69 = arith.mulf %62, %68 : vector<16x32xf32>
    %70 = arith.addf %34, %69 : vector<16x32xf32>
    %cst_33 = arith.constant 0.000000e+00 : f32
    %71 = vector.broadcast %cst_33 : f32 to vector<2x32xf32>
    %72 = tpu.concatenate %71, %70, %71 in 0 : vector<2x32xf32>, vector<16x32xf32>, vector<2x32xf32> -> vector<20x32xf32>
    %73 = arith.truncf %72 : vector<20x32xf32> to vector<20x32xbf16>
    %cst_34 = arith.constant 0.000000e+00 : f32
    %74 = vector.broadcast %cst_34 : f32 to vector<16x64xf32>
    %75 = vector.extract_strided_slice %73 {offsets = [0, 0], sizes = [16, 32], strides = [1, 1]} : vector<20x32xbf16> to vector<16x32xbf16>
    %c0_35 = arith.constant 0 : index
    %c0_36 = arith.constant 0 : index
    %76 = vector.load %arg8[%c0_35, %c0_36] : memref<160x64xbf16, #tpu.memory_space<vmem>>, vector<32x64xbf16>
    %cst_37 = arith.constant dense<0.000000e+00> : vector<16x64xf32>
    %77 = tpu.matmul %75, %76, %cst_37 {dimension_numbers = #tpu.dot_dimension_numbers<[1], [0], [0], [1], [0, 0, 1, 1], [], []>} : vector<16x32xbf16>, vector<32x64xbf16>, vector<16x64xf32> -> vector<16x64xf32>
    %78 = arith.addf %74, %77 : vector<16x64xf32>
    %79 = vector.extract_strided_slice %73 {offsets = [1, 0], sizes = [16, 32], strides = [1, 1]} : vector<20x32xbf16> to vector<16x32xbf16>
    %c32_38 = arith.constant 32 : index
    %c0_39 = arith.constant 0 : index
    %80 = vector.load %arg8[%c32_38, %c0_39] : memref<160x64xbf16, #tpu.memory_space<vmem>>, vector<32x64xbf16>
    %cst_40 = arith.constant dense<0.000000e+00> : vector<16x64xf32>
    %81 = tpu.matmul %79, %80, %cst_40 {dimension_numbers = #tpu.dot_dimension_numbers<[1], [0], [0], [1], [0, 0, 1, 1], [], []>} : vector<16x32xbf16>, vector<32x64xbf16>, vector<16x64xf32> -> vector<16x64xf32>
    %82 = arith.addf %78, %81 : vector<16x64xf32>
    %83 = vector.extract_strided_slice %73 {offsets = [2, 0], sizes = [16, 32], strides = [1, 1]} : vector<20x32xbf16> to vector<16x32xbf16>
    %c64_41 = arith.constant 64 : index
    %c0_42 = arith.constant 0 : index
    %84 = vector.load %arg8[%c64_41, %c0_42] : memref<160x64xbf16, #tpu.memory_space<vmem>>, vector<32x64xbf16>
    %cst_43 = arith.constant dense<0.000000e+00> : vector<16x64xf32>
    %85 = tpu.matmul %83, %84, %cst_43 {dimension_numbers = #tpu.dot_dimension_numbers<[1], [0], [0], [1], [0, 0, 1, 1], [], []>} : vector<16x32xbf16>, vector<32x64xbf16>, vector<16x64xf32> -> vector<16x64xf32>
    %86 = arith.addf %82, %85 : vector<16x64xf32>
    %87 = vector.extract_strided_slice %73 {offsets = [3, 0], sizes = [16, 32], strides = [1, 1]} : vector<20x32xbf16> to vector<16x32xbf16>
    %c96_44 = arith.constant 96 : index
    %c0_45 = arith.constant 0 : index
    %88 = vector.load %arg8[%c96_44, %c0_45] : memref<160x64xbf16, #tpu.memory_space<vmem>>, vector<32x64xbf16>
    %cst_46 = arith.constant dense<0.000000e+00> : vector<16x64xf32>
    %89 = tpu.matmul %87, %88, %cst_46 {dimension_numbers = #tpu.dot_dimension_numbers<[1], [0], [0], [1], [0, 0, 1, 1], [], []>} : vector<16x32xbf16>, vector<32x64xbf16>, vector<16x64xf32> -> vector<16x64xf32>
    %90 = arith.addf %86, %89 : vector<16x64xf32>
    %91 = vector.extract_strided_slice %73 {offsets = [4, 0], sizes = [16, 32], strides = [1, 1]} : vector<20x32xbf16> to vector<16x32xbf16>
    %c128_47 = arith.constant 128 : index
    %c0_48 = arith.constant 0 : index
    %92 = vector.load %arg8[%c128_47, %c0_48] : memref<160x64xbf16, #tpu.memory_space<vmem>>, vector<32x64xbf16>
    %cst_49 = arith.constant dense<0.000000e+00> : vector<16x64xf32>
    %93 = tpu.matmul %91, %92, %cst_49 {dimension_numbers = #tpu.dot_dimension_numbers<[1], [0], [0], [1], [0, 0, 1, 1], [], []>} : vector<16x32xbf16>, vector<32x64xbf16>, vector<16x64xf32> -> vector<16x64xf32>
    %94 = arith.addf %90, %93 : vector<16x64xf32>
    %c0_50 = arith.constant 0 : index
    %c0_51 = arith.constant 0 : index
    %95 = vector.load %arg9[%c0_50, %c0_51] : memref<1x64xf32, #tpu.memory_space<vmem>>, vector<1x64xf32>
    %96 = vector.broadcast %95 : vector<1x64xf32> to vector<16x64xf32>
    %97 = arith.addf %94, %96 : vector<16x64xf32>
    %98 = vector.extract_strided_slice %97 {offsets = [0, 0], sizes = [16, 32], strides = [1, 1]} : vector<16x64xf32> to vector<16x32xf32>
    %99 = vector.extract_strided_slice %97 {offsets = [0, 32], sizes = [16, 32], strides = [1, 1]} : vector<16x64xf32> to vector<16x32xf32>
    %100 = arith.negf %99 : vector<16x32xf32>
    %101 = math.exp %100 : vector<16x32xf32>
    %cst_52 = arith.constant 1.000000e+00 : f32
    %102 = vector.broadcast %cst_52 : f32 to vector<16x32xf32>
    %103 = arith.addf %102, %101 : vector<16x32xf32>
    %104 = arith.divf %102, %103 : vector<16x32xf32>
    %105 = arith.mulf %98, %104 : vector<16x32xf32>
    %106 = arith.addf %70, %105 : vector<16x32xf32>
    %107 = arith.truncf %106 : vector<16x32xf32> to vector<16x32xbf16>
    %c0_53 = arith.constant 0 : index
    %c0_54 = arith.constant 0 : index
    %108 = vector.load %arg10[%c0_53, %c0_54] : memref<32x96xbf16, #tpu.memory_space<vmem>>, vector<32x96xbf16>
    %cst_55 = arith.constant dense<0.000000e+00> : vector<16x96xf32>
    %109 = tpu.matmul %107, %108, %cst_55 {dimension_numbers = #tpu.dot_dimension_numbers<[1], [0], [0], [1], [0, 0, 1, 1], [], []>} : vector<16x32xbf16>, vector<32x96xbf16>, vector<16x96xf32> -> vector<16x96xf32>
    %c0_56 = arith.constant 0 : index
    %c0_57 = arith.constant 0 : index
    %110 = vector.load %arg11[%c0_56, %c0_57] : memref<1x96xf32, #tpu.memory_space<vmem>>, vector<1x96xf32>
    %111 = vector.broadcast %110 : vector<1x96xf32> to vector<16x96xf32>
    %112 = arith.addf %109, %111 : vector<16x96xf32>
    %113 = vector.extract_strided_slice %112 {offsets = [0, 0], sizes = [16, 16], strides = [1, 1]} : vector<16x96xf32> to vector<16x16xf32>
    %114 = arith.truncf %113 : vector<16x16xf32> to vector<16x16xbf16>
    %c0_58 = arith.constant 0 : index
    %c0_59 = arith.constant 0 : index
    %c0_60 = arith.constant 0 : index
    %115 = vector.load %arg17[%c0_58, %c0_59, %c0_60] : memref<2x16x16xbf16, #tpu.memory_space<vmem>>, vector<1x16x16xbf16>
    %116 = vector.shape_cast %115 : vector<1x16x16xbf16> to vector<16x16xbf16>
    %117 = vector.shape_cast %114 : vector<16x16xbf16> to vector<1x16x16xbf16>
    tpu.vector_store %arg17[%c0_58, %c0_59, %c0_60], %117 {strides = array<i32>} : memref<2x16x16xbf16, #tpu.memory_space<vmem>>, vector<1x16x16xbf16>,
    %118 = vector.extract_strided_slice %112 {offsets = [0, 32], sizes = [16, 16], strides = [1, 1]} : vector<16x96xf32> to vector<16x16xf32>
    %119 = arith.truncf %118 : vector<16x16xf32> to vector<16x16xbf16>
    %c0_61 = arith.constant 0 : index
    %c0_62 = arith.constant 0 : index
    %c0_63 = arith.constant 0 : index
    %120 = vector.load %arg18[%c0_61, %c0_62, %c0_63] : memref<2x16x16xbf16, #tpu.memory_space<vmem>>, vector<1x16x16xbf16>
    %121 = vector.shape_cast %120 : vector<1x16x16xbf16> to vector<16x16xbf16>
    %122 = vector.shape_cast %119 : vector<16x16xbf16> to vector<1x16x16xbf16>
    tpu.vector_store %arg18[%c0_61, %c0_62, %c0_63], %122 {strides = array<i32>} : memref<2x16x16xbf16, #tpu.memory_space<vmem>>, vector<1x16x16xbf16>,
    %123 = vector.extract_strided_slice %112 {offsets = [0, 64], sizes = [16, 16], strides = [1, 1]} : vector<16x96xf32> to vector<16x16xf32>
    %124 = arith.truncf %123 : vector<16x16xf32> to vector<16x16xbf16>
    %c0_64 = arith.constant 0 : index
    %c0_65 = arith.constant 0 : index
    %c0_66 = arith.constant 0 : index
    %125 = vector.load %arg19[%c0_64, %c0_65, %c0_66] : memref<2x16x16xbf16, #tpu.memory_space<vmem>>, vector<1x16x16xbf16>
    %126 = vector.shape_cast %125 : vector<1x16x16xbf16> to vector<16x16xbf16>
    %127 = vector.shape_cast %124 : vector<16x16xbf16> to vector<1x16x16xbf16>
    tpu.vector_store %arg19[%c0_64, %c0_65, %c0_66], %127 {strides = array<i32>} : memref<2x16x16xbf16, #tpu.memory_space<vmem>>, vector<1x16x16xbf16>,
    %128 = vector.extract_strided_slice %112 {offsets = [0, 16], sizes = [16, 16], strides = [1, 1]} : vector<16x96xf32> to vector<16x16xf32>
    %129 = arith.truncf %128 : vector<16x16xf32> to vector<16x16xbf16>
    %c1 = arith.constant 1 : index
    %c0_67 = arith.constant 0 : index
    %c0_68 = arith.constant 0 : index
    %130 = vector.load %arg17[%c1, %c0_67, %c0_68] : memref<2x16x16xbf16, #tpu.memory_space<vmem>>, vector<1x16x16xbf16>
    %131 = vector.shape_cast %130 : vector<1x16x16xbf16> to vector<16x16xbf16>
    %132 = vector.shape_cast %129 : vector<16x16xbf16> to vector<1x16x16xbf16>
    tpu.vector_store %arg17[%c1, %c0_67, %c0_68], %132 {strides = array<i32>} : memref<2x16x16xbf16, #tpu.memory_space<vmem>>, vector<1x16x16xbf16>,
    %133 = vector.extract_strided_slice %112 {offsets = [0, 48], sizes = [16, 16], strides = [1, 1]} : vector<16x96xf32> to vector<16x16xf32>
    %134 = arith.truncf %133 : vector<16x16xf32> to vector<16x16xbf16>
    %c1_69 = arith.constant 1 : index
    %c0_70 = arith.constant 0 : index
    %c0_71 = arith.constant 0 : index
    %135 = vector.load %arg18[%c1_69, %c0_70, %c0_71] : memref<2x16x16xbf16, #tpu.memory_space<vmem>>, vector<1x16x16xbf16>
    %136 = vector.shape_cast %135 : vector<1x16x16xbf16> to vector<16x16xbf16>
    %137 = vector.shape_cast %134 : vector<16x16xbf16> to vector<1x16x16xbf16>
    tpu.vector_store %arg18[%c1_69, %c0_70, %c0_71], %137 {strides = array<i32>} : memref<2x16x16xbf16, #tpu.memory_space<vmem>>, vector<1x16x16xbf16>,
    %138 = vector.extract_strided_slice %112 {offsets = [0, 80], sizes = [16, 16], strides = [1, 1]} : vector<16x96xf32> to vector<16x16xf32>
    %139 = arith.truncf %138 : vector<16x16xf32> to vector<16x16xbf16>
    %c1_72 = arith.constant 1 : index
    %c0_73 = arith.constant 0 : index
    %c0_74 = arith.constant 0 : index
    %140 = vector.load %arg19[%c1_72, %c0_73, %c0_74] : memref<2x16x16xbf16, #tpu.memory_space<vmem>>, vector<1x16x16xbf16>
    %141 = vector.shape_cast %140 : vector<1x16x16xbf16> to vector<16x16xbf16>
    %142 = vector.shape_cast %139 : vector<16x16xbf16> to vector<1x16x16xbf16>
    tpu.vector_store %arg19[%c1_72, %c0_73, %c0_74], %142 {strides = array<i32>} : memref<2x16x16xbf16, #tpu.memory_space<vmem>>, vector<1x16x16xbf16>,
    %c0_75 = arith.constant 0 : index
    %c0_76 = arith.constant 0 : index
    %143 = vector.load %arg13[%c0_75, %c0_76] : memref<1x32xf32, #tpu.memory_space<vmem>>, vector<1x32xf32>
    %144 = vector.broadcast %143 : vector<1x32xf32> to vector<16x32xf32>
    %145 = arith.addf %106, %144 : vector<16x32xf32>
    %c0_77 = arith.constant 0 : index
    %c0_78 = arith.constant 0 : index
    %146 = vector.load %arg20[%c0_77, %c0_78] : memref<16x32xf32, #tpu.memory_space<vmem>>, vector<16x32xf32>
    tpu.vector_store %arg20[%c0_77, %c0_78], %145 {strides = array<i32>} : memref<16x32xf32, #tpu.memory_space<vmem>>, vector<16x32xf32>,
    %c0_i32 = arith.constant 0 : i32
    %c2_i32 = arith.constant 2 : i32
    %147 = arith.addi %c0_i32, %c2_i32 : i32
    %c1_i32 = arith.constant 1 : i32
    scf.for %arg21 = %c0_i32 to %147 step %c1_i32  : i32 {
      %161 = arith.index_cast %arg21 : i32 to index
      %c0_92 = arith.constant 0 : index
      %c0_93 = arith.constant 0 : index
      %162 = vector.load %arg18[%161, %c0_92, %c0_93] : memref<2x16x16xbf16, #tpu.memory_space<vmem>>, vector<1x16x16xbf16>
      %163 = vector.shape_cast %162 : vector<1x16x16xbf16> to vector<16x16xbf16>
      %164 = arith.index_cast %arg21 : i32 to index
      %c0_94 = arith.constant 0 : index
      %c0_95 = arith.constant 0 : index
      %165 = vector.load %arg19[%164, %c0_94, %c0_95] : memref<2x16x16xbf16, #tpu.memory_space<vmem>>, vector<1x16x16xbf16>
      %166 = vector.shape_cast %165 : vector<1x16x16xbf16> to vector<16x16xbf16>
      %167 = arith.index_cast %arg21 : i32 to index
      %c0_96 = arith.constant 0 : index
      %c0_97 = arith.constant 0 : index
      %168 = vector.load %arg12[%167, %c0_96, %c0_97] : memref<2x16x32xbf16, #tpu.memory_space<vmem>>, vector<1x16x32xbf16>
      %169 = vector.shape_cast %168 : vector<1x16x32xbf16> to vector<16x32xbf16>
      %c0_i32_98 = arith.constant 0 : i32
      %c16_i32 = arith.constant 16 : i32
      %170 = arith.muli %c0_i32_98, %c16_i32 : i32
      %171 = tpu.assume_multiple %170, 16 : i32
      %172 = arith.index_cast %arg21 : i32 to index
      %173 = arith.index_cast %171 : i32 to index
      %c0_99 = arith.constant 0 : index
      %174 = vector.load %arg17[%172, %173, %c0_99] : memref<2x16x16xbf16, #tpu.memory_space<vmem>>, vector<1x16x16xbf16>
      %175 = vector.shape_cast %174 : vector<1x16x16xbf16> to vector<16x16xbf16>
      %cst_100 = arith.constant dense<0.000000e+00> : vector<16x16xf32>
      %176 = tpu.matmul %175, %163, %cst_100 {dimension_numbers = #tpu.dot_dimension_numbers<[1], [1], [0], [0], [0, 0, 1, 0], [], []>} : vector<16x16xbf16>, vector<16x16xbf16>, vector<16x16xf32> -> vector<16x16xf32>
      %cst_101 = arith.constant dense<0xFF800000> : vector<16xf32>
      %177 = vector.multi_reduction <maximumf>, %176, %cst_101 [1] : vector<16x16xf32> to vector<16xf32>
      %178 = vector.shape_cast %177 : vector<16xf32> to vector<16x1xf32>
      %179 = vector.broadcast %178 : vector<16x1xf32> to vector<16x16xf32>
      %180 = arith.subf %176, %179 : vector<16x16xf32>
      %181 = math.exp %180 : vector<16x16xf32>
      %cst_102 = arith.constant dense<0.000000e+00> : vector<16xf32>
      %182 = vector.multi_reduction <add>, %181, %cst_102 [1] : vector<16x16xf32> to vector<16xf32>
      %183 = vector.shape_cast %182 : vector<16xf32> to vector<16x1xf32>
      %184 = tpu.reciprocal %183 {approx = true} : vector<16x1xf32> -> vector<16x1xf32>
      %185 = vector.broadcast %184 : vector<16x1xf32> to vector<16x16xf32>
      %186 = arith.mulf %181, %185 : vector<16x16xf32>
      %187 = arith.truncf %186 : vector<16x16xf32> to vector<16x16xbf16>
      %cst_103 = arith.constant dense<0.000000e+00> : vector<16x16xf32>
      %188 = tpu.matmul %187, %166, %cst_103 {dimension_numbers = #tpu.dot_dimension_numbers<[1], [0], [0], [1], [0, 0, 1, 1], [], []>} : vector<16x16xbf16>, vector<16x16xbf16>, vector<16x16xf32> -> vector<16x16xf32>
      %189 = arith.index_cast %171 : i32 to index
      %c0_104 = arith.constant 0 : index
      %190 = vector.load %arg20[%189, %c0_104] : memref<16x32xf32, #tpu.memory_space<vmem>>, vector<16x32xf32>
      %191 = arith.truncf %188 : vector<16x16xf32> to vector<16x16xbf16>
      %cst_105 = arith.constant dense<0.000000e+00> : vector<16x32xf32>
      %192 = tpu.matmul %191, %169, %cst_105 {dimension_numbers = #tpu.dot_dimension_numbers<[1], [0], [0], [1], [0, 0, 1, 1], [], []>} : vector<16x16xbf16>, vector<16x32xbf16>, vector<16x32xf32> -> vector<16x32xf32>
      %193 = arith.addf %190, %192 : vector<16x32xf32>
      %194 = arith.index_cast %171 : i32 to index
      %c0_106 = arith.constant 0 : index
      %195 = vector.load %arg20[%194, %c0_106] : memref<16x32xf32, #tpu.memory_space<vmem>>, vector<16x32xf32>
      tpu.vector_store %arg20[%194, %c0_106], %193 {strides = array<i32>} : memref<16x32xf32, #tpu.memory_space<vmem>>, vector<16x32xf32>,
      %c1_i32_107 = arith.constant 1 : i32
    }
    %c2_i32_79 = arith.constant 2 : i32
    %c0_80 = arith.constant 0 : index
    %c0_81 = arith.constant 0 : index
    %148 = vector.load %arg20[%c0_80, %c0_81] : memref<16x32xf32, #tpu.memory_space<vmem>>, vector<16x32xf32>
    %cst_82 = arith.constant dense<0.000000e+00> : vector<32xf32>
    %149 = vector.multi_reduction <add>, %148, %cst_82 [0] : vector<16x32xf32> to vector<32xf32>
    %150 = vector.shape_cast %149 : vector<32xf32> to vector<1x32xf32>
    %cst_83 = arith.constant 1.600000e+01 : f32
    %151 = vector.broadcast %cst_83 : f32 to vector<1x32xf32>
    %152 = arith.divf %150, %151 : vector<1x32xf32>
    %153 = arith.truncf %152 : vector<1x32xf32> to vector<1x32xbf16>
    %c0_84 = arith.constant 0 : index
    %c0_85 = arith.constant 0 : index
    %154 = vector.load %arg14[%c0_84, %c0_85] : memref<32x64xbf16, #tpu.memory_space<vmem>>, vector<32x64xbf16>
    %cst_86 = arith.constant dense<0.000000e+00> : vector<1x64xf32>
    %155 = tpu.matmul %153, %154, %cst_86 {dimension_numbers = #tpu.dot_dimension_numbers<[1], [0], [0], [1], [0, 0, 1, 1], [], []>} : vector<1x32xbf16>, vector<32x64xbf16>, vector<1x64xf32> -> vector<1x64xf32>
    %c0_87 = arith.constant 0 : index
    %c0_88 = arith.constant 0 : index
    %156 = vector.load %arg15[%c0_87, %c0_88] : memref<1x64xf32, #tpu.memory_space<vmem>>, vector<1x64xf32>
    %157 = arith.addf %155, %156 : vector<1x64xf32>
    %c0_89 = arith.constant 0 : index
    %c0_90 = arith.constant 0 : index
    %c0_91 = arith.constant 0 : index
    %158 = vector.load %arg16[%c0_89, %c0_90, %c0_91] : memref<1x1x64xf32, #tpu.memory_space<vmem>>, vector<1x1x64xf32>
    %159 = vector.shape_cast %158 : vector<1x1x64xf32> to vector<1x64xf32>
    %160 = vector.shape_cast %157 : vector<1x64xf32> to vector<1x1x64xf32>
    tpu.vector_store %arg16[%c0_89, %c0_90, %c0_91], %160 {strides = array<i32>} : memref<1x1x64xf32, #tpu.memory_space<vmem>>, vector<1x1x64xf32>,
    return
  }
  func.func @transform_0(%arg0: i32) -> (i32, i32, i32) {
    %c0_i32 = arith.constant 0 : i32
    %c0_i32_0 = arith.constant 0 : i32
    %c0_i32_1 = arith.constant 0 : i32
    return %arg0, %c0_i32, %c0_i32_0 : i32, i32, i32
  }
  func.func @transform_1(%arg0: i32) -> (i32, i32) {
    %c0_i32 = arith.constant 0 : i32
    %c0_i32_0 = arith.constant 0 : i32
    %c0_i32_1 = arith.constant 0 : i32
    return %c0_i32, %c0_i32_0 : i32, i32
  }
  func.func @transform_2(%arg0: i32) -> (i32, i32) {
    %c0_i32 = arith.constant 0 : i32
    %c0_i32_0 = arith.constant 0 : i32
    %c0_i32_1 = arith.constant 0 : i32
    return %c0_i32, %c0_i32_0 : i32, i32
  }
  func.func @transform_3(%arg0: i32) -> (i32, i32) {
    %c0_i32 = arith.constant 0 : i32
    %c0_i32_0 = arith.constant 0 : i32
    %c0_i32_1 = arith.constant 0 : i32
    return %c0_i32, %c0_i32_0 : i32, i32
  }
  func.func @transform_4(%arg0: i32) -> (i32, i32) {
    %c0_i32 = arith.constant 0 : i32
    %c0_i32_0 = arith.constant 0 : i32
    %c0_i32_1 = arith.constant 0 : i32
    return %c0_i32, %c0_i32_0 : i32, i32
  }
  func.func @transform_5(%arg0: i32) -> (i32, i32) {
    %c0_i32 = arith.constant 0 : i32
    %c0_i32_0 = arith.constant 0 : i32
    %c0_i32_1 = arith.constant 0 : i32
    return %c0_i32, %c0_i32_0 : i32, i32
  }
  func.func @transform_6(%arg0: i32) -> (i32, i32) {
    %c0_i32 = arith.constant 0 : i32
    %c0_i32_0 = arith.constant 0 : i32
    %c0_i32_1 = arith.constant 0 : i32
    return %c0_i32, %c0_i32_0 : i32, i32
  }
  func.func @transform_7(%arg0: i32) -> (i32, i32) {
    %c0_i32 = arith.constant 0 : i32
    %c0_i32_0 = arith.constant 0 : i32
    %c0_i32_1 = arith.constant 0 : i32
    return %c0_i32, %c0_i32_0 : i32, i32
  }
  func.func @transform_8(%arg0: i32) -> (i32, i32) {
    %c0_i32 = arith.constant 0 : i32
    %c0_i32_0 = arith.constant 0 : i32
    %c0_i32_1 = arith.constant 0 : i32
    return %c0_i32, %c0_i32_0 : i32, i32
  }
  func.func @transform_9(%arg0: i32) -> (i32, i32) {
    %c0_i32 = arith.constant 0 : i32
    %c0_i32_0 = arith.constant 0 : i32
    %c0_i32_1 = arith.constant 0 : i32
    return %c0_i32, %c0_i32_0 : i32, i32
  }
  func.func @transform_10(%arg0: i32) -> (i32, i32) {
    %c0_i32 = arith.constant 0 : i32
    %c0_i32_0 = arith.constant 0 : i32
    %c0_i32_1 = arith.constant 0 : i32
    return %c0_i32, %c0_i32_0 : i32, i32
  }
  func.func @transform_11(%arg0: i32) -> (i32, i32, i32) {
    %c0_i32 = arith.constant 0 : i32
    %c0_i32_0 = arith.constant 0 : i32
    %c0_i32_1 = arith.constant 0 : i32
    %c0_i32_2 = arith.constant 0 : i32
    return %c0_i32, %c0_i32_0, %c0_i32_1 : i32, i32, i32
  }
  func.func @transform_12(%arg0: i32) -> (i32, i32) {
    %c0_i32 = arith.constant 0 : i32
    %c0_i32_0 = arith.constant 0 : i32
    %c0_i32_1 = arith.constant 0 : i32
    return %c0_i32, %c0_i32_0 : i32, i32
  }
  func.func @transform_13(%arg0: i32) -> (i32, i32) {
    %c0_i32 = arith.constant 0 : i32
    %c0_i32_0 = arith.constant 0 : i32
    %c0_i32_1 = arith.constant 0 : i32
    return %c0_i32, %c0_i32_0 : i32, i32
  }
  func.func @transform_14(%arg0: i32) -> (i32, i32) {
    %c0_i32 = arith.constant 0 : i32
    %c0_i32_0 = arith.constant 0 : i32
    %c0_i32_1 = arith.constant 0 : i32
    return %c0_i32, %c0_i32_0 : i32, i32
  }
  func.func @transform_15(%arg0: i32) -> (i32, i32, i32) {
    %c0_i32 = arith.constant 0 : i32
    %c0_i32_0 = arith.constant 0 : i32
    %c0_i32_1 = arith.constant 0 : i32
    return %arg0, %c0_i32, %c0_i32_0 : i32, i32, i32
  }
}

</mosaic_0001>

<bundles_post_ra>
// kernel: tpu_custom_call.1
= control target key start
LH: loop header
LB: loop body
LE: loop exit
PB: predicated region body
PF: predicated region fallthrough
CT: control target
= control target key end

     0   :  { %s2836_s0 = inlined_call_operand.vmem [shape: bf16[2,16,16], index: 0, kind: input, shape index: {}]   ;;  %s2837_s1 = inlined_call_operand.vmem [shape: bf16[16,32], index: 1, kind: input, shape index: {}]   ;;  %s2838_s2 = inlined_call_operand.vmem [shape: f32[1,32], index: 2, kind: input, shape index: {}]   ;;  %s2839_s3 = inlined_call_operand.vmem [shape: bf16[32,32], index: 3, kind: input, shape index: {}]   ;;  %s2840_s4 = inlined_call_operand.vmem [shape: f32[1,32], index: 4, kind: input, shape index: {}]   ;;  %s2841_s5 = inlined_call_operand.vmem [shape: bf16[160,64], index: 5, kind: input, shape index: {}]   ;;  %s2842_s6 = inlined_call_operand.vmem [shape: f32[1,64], index: 6, kind: input, shape index: {}]   ;;  %s2843_s7 = inlined_call_operand.vmem [shape: bf16[160,64], index: 7, kind: input, shape index: {}]   ;;  %s2844_s8 = inlined_call_operand.vmem [shape: f32[1,64], index: 8, kind: input, shape index: {}]   ;;  %s2845_s9 = inlined_call_operand.vmem [shape: bf16[32,96], index: 9, kind: input, shape index: {}]   ;;  %s2846_s10 = inlined_call_operand.vmem [shape: f32[1,96], index: 10, kind: input, shape index: {}]   ;;  %s2847_s11 = inlined_call_operand.vmem [shape: bf16[2,16,32], index: 11, kind: input, shape index: {}]   ;;  %s2848_s12 = inlined_call_operand.vmem [shape: f32[1,32], index: 12, kind: input, shape index: {}]   ;;  %s2849_s13 = inlined_call_operand.vmem [shape: bf16[32,64], index: 13, kind: input, shape index: {}]   ;;  %s2850_s14 = inlined_call_operand.vmem [shape: f32[1,64], index: 14, kind: input, shape index: {}]   ;;  %s2851_s15 = inlined_call_operand.hbm [shape: f32[2,1,64], index: 15, kind: output, shape index: {}]  }
   0x1   :  { %2852 = sst [smem:[#allocation10_spill]] %s2836_s0 }
   0x2   :  { %2853 = sst [smem:[#allocation11_spill]] %s2837_s1 }
   0x3   :  { %2854 = sst [smem:[#allocation12_spill]] %s2838_s2 }
   0x4   :  { %2855 = sst [smem:[#allocation13_spill]] %s2839_s3 }
   0x5   :  { %20 = vsyncpa [#allocation7], 0 }
   0x6   :  { %22 = vsyncpa [#allocation7 + $0x1], 0  ;;  %s2475_s18 = smov 0   ;;  %s2477_s19 = smov 0  }
   0x7   :  { %s2479_s20 = smov 0   ;;  %s2481_s21 = smov 0  }
   0x8 LB: > { %s2496_s22 = sadd.s32 4294967295, %s2379_s21   ;;  %s1930_s23 = sadd.s32 4294967294, %s2379_s21   ;;  %s2379_s21 = sphi %s2481_s21, %s2869_s21   ;;  %s2375_s20 = sphi %s2479_s20, %s2868_s20   ;;  %s2371_s19 = sphi %s2477_s19, %s2867_s19   ;;  %s2367_s18 = sphi %s2475_s18, %s2866_s18  }
   0x9   : > { %s2500_s24 = sadd.s32 1, %s2379_s21   ;;  %s355_s25 = sadd.s32 1, %s2375_s20 }
   0xa   : > { %s352_s26 = ssub.s32 %s2379_s21, %s2500_s24  ;;  %p365_p0 = scmp.ne.s32.totalorder %s2375_s20, %s2371_s19 }
   0xb   : > { %p353_p1 = scmp.eq.s32.totalorder %s352_s26, 0  ;;  %p366_p2 = scmp.eq.s32.totalorder %s2496_s22, 1 }
   0xc   : > { %p371_p3 = scmp.ne.s32.totalorder %s2371_s19, %s2367_s18  ;;  %p372_p4 = scmp.eq.s32.totalorder %s1930_s23, 1 }
   0xd   : > { %s2511_s27 = scalar_select %p353_p1, %s2375_s20, %s355_s25  }
   0xe   : > { %p2513_p5 = por %p366_p2, %p365_p0  ;;  %p2517_p6 = por %p372_p4, %p371_p3 }
   0xf   : > { %2856 = sst [smem:[#allocation9_spill]] %s2511_s27  ;;  %p1933_p7 = scmp.ge.s32.totalorder %s2379_s21, 1 }
  0x10   : > { %p440_p8 = scmp.lt.s32.totalorder %s2379_s21, 3 }
  0x12   : > { %p441_p9 = pnand %p1933_p7, %p440_p8 }
  0x13   : > { %s2859_s1 = sld [smem:[#allocation11_spill]] (!%p441_p9)  ;;  %p487_p10 = scmp.lt.s32.totalorder (!%p441_p9), %s2496_s22, 1 }
  0x14   : > { %444 = sbr.rel (%p441_p9) target bundleno = 2762 (0xaca), region = 80  ;;  %s2860_s0 = sld [smem:[#allocation10_spill]] (!%p441_p9) }
  0x15   : > { %s2861_s3 = sld [smem:[#allocation13_spill]] (!%p441_p9)  ;;  %s2387_s30 = smov (!%p441_p9), 96  }
  0x16   : > { %s2862_s2 = sld [smem:[#allocation12_spill]] (!%p441_p9)  ;;  %s2388_s26 = smov (!%p441_p9), 64  }
  0x17   : > { %s2390_s17 = smov (!%p441_p9), 80  }
  0x19   : > { %v2385_v0 = vmov 0.0   ;;  %v2243_v1 = vld [vmem:[%s2859_s1] sm:$0xff]   ;;  %vm2386_vm0 = vmmov 0   ;;  %s488_s23 = scalar_select %p487_p10, %s2496_s22, 1  ;;  %vm515_vm1 = vcmask 130048   ;;  %vm602_vm2 = vcmask 261120  }
  0x1a   : > { %2059 = vmatprep.subr.bf16.mxu0 %v2385_v0  ;;  %2065 = vmatprep.subr.bf16.mxu1 %v2385_v0  ;;  %v2247_v31 = vld [vmem:[%s2841_s5 + $0x8] sm:$0xff]   ;;  %v2248_v32 = vld [vmem:[%s2841_s5] sm:$0xff]   ;;  %v2249_v33 = vld [vmem:[%s2841_s5 + $0x18] sm:$0xff]   ;;  %vm667_vm3 = vcmask 1041408   ;;  %vm686_vm4 = vsmask.f32 7424 }
  0x1b   : > { %2061 = vmatprep.mubr.msk.bf16.mxu0 %vm2386_vm0, %v2385_v0  ;;  %2069 = vmatprep.mubr.msk.bf16.mxu1 %vm2386_vm0, %v2385_v0  ;;  %s2005_s25 = sshll.u32 %s488_s23, 3  ;;  %v2245_v3 = vld [vmem:[%s2861_s3 + $0x8] sm:$0xff]   ;;  %v2246_v4 = vld [vmem:[%s2861_s3] sm:$0xff]   ;;  %v2251_v34 = vld [vmem:[%s2841_s5 + $0x10] sm:$0xff]   ;;  %vm882_vm5 = vsmask.f32 6400 }
  0x1c   : > { %2060 = vmatpush3.bf16.msra.mxu0 %v2243_v1  ;;  %s491_s16 = scalar_lea.vmem %s2860_s0, %s2005_s25  ;;  %2066 = vmatpush3.bf16.msra.mxu1 %v2245_v3  ;;  %v1936_v5 = vld [vmem:[%s2862_s2] ss:$0 sm:$0xff]  ;;  %vm816_vm6 = vcmask 1046528   ;;  %vm954_vm7 = vcmask 1045504   ;;  %vm1504_vm8 = vcmask 125952   ;;  %s2391_s23 = smov 48  }
  0x1d   : > { %2073 = vmatprep.subr.bf16.mxu0 %v2385_v0  ;;  %v2244_v2 = vld [vmem:[%s491_s16] sm:$0xff]   ;;  %2067 = vmatprep.subr.bf16.mxu1 %v2385_v0  ;;  %s2389_s16 = smov 112   ;;  %s2740_s1 = smov 0  }
  0x1e   : > { %v1940_v35 = vld [vmem:[%s2840_s4] ss:$0 sm:$0xff] }
  0x1f   : > { %2062 = vmatmul.mubr.msk.bf16.vlgmr.msra.gmra.mxu0 %vm515_vm1, %v2244_v2  ;;  %v2250_v2 = vld [vmem:[%s2841_s5 + $0x38] sm:$0xff]  }
  0x20   : > { %2077 = vmatprep.mubr.msk.bf16.mxu0 %vm2386_vm0, %v2385_v0  ;;  %2068 = vmatpush3.bf16.msra.mxu1 %v2246_v4 }
  0x21   : > { %2081 = vmatprep.subr.bf16.mxu1 %v2385_v0  ;;  %2074 = vmatpush3.bf16.msra.mxu0 %v2249_v33 }
  0x22   : > { %2075 = vmatprep.subr.bf16.mxu0 %v2385_v0 }
  0x25   : > { %2076 = vmatpush3.bf16.msra.mxu0 %v2251_v34 }
  0x26   : > { %2089 = vmatprep.subr.bf16.mxu0 %v2385_v0 }
  0xdf   : > { %v553_v6 = vpop.f32.mrf.mxu0 }
  0xe0   : > { %v554_v7 = vadd.f32 %v1936_v5, %v553_v6 }
  0xe1   : > { %v2063_v8 = vpop.f32.mrf.mxu0 }
  0xe2   : > { %v560_v9 = vmin.f32 %v554_v7, 20.0 }
  0xe3   : > { %v556_v10 = vpop.f32.mrf.mxu0 }
  0xe4   : > { %v562_v11 = vmul.f32 1.442695, %v560_v9  ;;  %v557_v12 = vadd.f32 %v1936_v5, %v556_v10  ;;  %v2252_v9 = vld [vmem:[%s2841_s5 + $0x30] sm:$0xff]  }
  0xe5   : > { %v2064_v13 = vpop.f32.mrf.mxu0 }
  0xe6   : > { %2269 = vpow2.f32 %v562_v11  ;;  %v561_v14 = vmin.f32 %v557_v12, 20.0 }
  0xe8   : > { %v564_v15 = vmul.f32 1.442695, %v561_v14 }
  0xea   : > { %2271 = vpow2.f32 %v564_v15 }
  0xf3   : > { %v2270_v16 = vpop.eup %2269 }
  0xf4   : > { %v566_v17 = vadd.f32 2.0, %v2270_v16 }
  0xf6   : > { %v568_v18 = vmul.f32 %v2270_v16, %v566_v17  ;;  %v2253_v17 = vld [vmem:[%s2841_s5 + $0x28] sm:$0xff]  }
  0xf7   : > { %v2272_v19 = vpop.eup %2271 }
  0xf8   : > { %v572_v20 = vadd.f32 2.0, %v568_v18  ;;  %v567_v21 = vadd.f32 2.0, %v2272_v19  ;;  %v570_v25 = vmul.f32 %v568_v18, %v554_v7 }
  0xfa   : > { %v569_v22 = vmul.f32 %v2272_v19, %v567_v21  ;;  %2273 = vrcp.f32 %v572_v20 }
  0xfc   : > { %v573_v23 = vadd.f32 2.0, %v569_v22  ;;  %v571_v26 = vmul.f32 %v569_v22, %v557_v12  ;;  %v2254_v22 = vld [vmem:[%s2841_s5 + $0x20] sm:$0xff]  }
  0xfe   : > { %2275 = vrcp.f32 %v573_v23 }
 0x107   : > { %v2274_v24 = vpop.eup %2273 }
 0x108   : > { %v576_v28 = vmul.f32 %v2274_v24, %v570_v25  ;;  %v2255_v25 = vld [vmem:[%s2841_s5 + $0x48] sm:$0xff]  }
 0x10b   : > { %v2276_v27 = vpop.eup %2275 }
 0x10c   : > { %v577_v29 = vmul.f32 %v2276_v27, %v571_v26  ;;  %v2256_v27 = vld [vmem:[%s2841_s5 + $0x40] sm:$0xff]  }
 0x10e   : > { %v578_v30 = vpack.c.bf16 %v577_v29, %v576_v28 }
 0x110   : > { %2070 = vmatmul.mubr.msk.bf16.vlgmr.msra.gmra.mxu1 %vm602_vm2, %v578_v30 }
 0x111   : > { %2085 = vmatprep.mubr.msk.bf16.mxu1 %vm2386_vm0, %v2385_v0  ;;  %2082 = vmatpush3.bf16.msra.mxu1 %v2247_v31 }
 0x112   : > { %2083 = vmatprep.subr.bf16.mxu1 %v2385_v0 }
 0x115   : > { %2084 = vmatpush3.bf16.msra.mxu1 %v2248_v32 }
 0x116   : > { %2097 = vmatprep.subr.bf16.mxu1 %v2385_v0 }
 0x1d0   : > { %v640_v36 = vpop.f32.mrf.mxu1 }
 0x1d1   : > { %v641_v37 = vadd.f32 %v1940_v35, %v640_v36 }
 0x1d2   : > { %v2071_v38 = vpop.f32.mrf.mxu1 }
 0x1d3   : > { %v647_v39 = vmin.f32 %v641_v37, 20.0 }
 0x1d4   : > { %v643_v40 = vpop.f32.mrf.mxu1 }
 0x1d5   : > { %v649_v41 = vmul.f32 1.442695, %v647_v39  ;;  %v644_v42 = vadd.f32 %v1940_v35, %v643_v40 }
 0x1d6   : > { %v2072_v43 = vpop.f32.mrf.mxu1 }
 0x1d7   : > { %2277 = vpow2.f32 %v649_v41  ;;  %v648_v44 = vmin.f32 %v644_v42, 20.0 }
 0x1d9   : > { %v651_v45 = vmul.f32 1.442695, %v648_v44 }
 0x1db   : > { %2279 = vpow2.f32 %v651_v45 }
 0x1e4   : > { %v2278_v46 = vpop.eup %2277 }
 0x1e5   : > { %v653_v47 = vadd.f32 2.0, %v2278_v46 }
 0x1e7   : > { %v655_v48 = vmul.f32 %v2278_v46, %v653_v47 }
 0x1e8   : > { %v2280_v49 = vpop.eup %2279 }
 0x1e9   : > { %v659_v50 = vadd.f32 2.0, %v655_v48  ;;  %v654_v51 = vadd.f32 2.0, %v2280_v49  ;;  %v657_v54 = vmul.f32 %v655_v48, %v641_v37 }
 0x1eb   : > { %2281 = vrcp.f32 %v659_v50  ;;  %v656_v52 = vmul.f32 %v2280_v49, %v654_v51 }
 0x1ed   : > { %v660_v53 = vadd.f32 2.0, %v656_v52  ;;  %v658_v57 = vmul.f32 %v656_v52, %v644_v42 }
 0x1ef   : > { %2283 = vrcp.f32 %v660_v53  ;;  %v1959_v53 = vld [vmem:[%s2842_s6] ss:$0 sm:$0xff] }
 0x1f8   : > { %v2282_v55 = vpop.eup %2281 }
 0x1f9   : > { %v2575_v56 = vmul.f32 %v2282_v55, %v657_v54 }
 0x1fb   : > { %v668_v59 = vrot.slane %v2575_v56, 6 }
 0x1fc   : > { %v2284_v58 = vpop.eup %2283 }
 0x1fd   : > { %v2578_v60 = vmul.f32 %v2284_v58, %v658_v57  ;;  %v674_v62 = vsel %vm667_vm3, 0.0, %v668_v59 }
 0x1ff   : > { %v669_v61 = vrot.slane %v2578_v60, 6 }
 0x201   : > { %v670_v63 = vsel %vm667_vm3, %v668_v59, %v669_v61  ;;  %v675_v1 = vsel %vm667_vm3, %v669_v61, 0.0 }
 0x202   : > { %v677_v3 = vpack.c.bf16 %v675_v1, %v675_v1  ;;  %v676_v4 = vpack.c.bf16 %v670_v63, %v674_v62 }
 0x204   : > { %2086 = vmatmul.mubr.msk.bf16.vlgmr.msra.gmra.mxu1 %vm602_vm2, %v676_v4  ;;  %v688_v5 = vshrl.u32 %v676_v4, 16  ;;  %v690_v6 = vshll.u32 %v676_v4, 16  ;;  %v695_v7 = vshll.u32 %v677_v3, 16  ;;  %v886_v8 = vshrl.u32 %v677_v3, 16 }
 0x205   : > { %2098 = vmatpush3.bf16.msra.mxu1 %v2250_v2  ;;  %2101 = vmatprep.mubr.msk.bf16.mxu1 %vm2386_vm0, %v2385_v0  ;;  %v817_v23 = vrot.slane %v676_v4, 1  ;;  %v818_v24 = vrot.slane %v677_v3, 1  ;;  %v955_v28 = vrot.slane %v676_v4, 2  ;;  %v956_v29 = vrot.slane %v677_v3, 2 }
 0x206   : > { %2099 = vmatprep.subr.bf16.mxu1 %v2385_v0  ;;  %v692_v10 = vrot.slane %v690_v6, 1  ;;  %v883_v11 = vrot.slane %v688_v5, 1  ;;  %v884_v12 = vrot.slane %v690_v6, 2  ;;  %v888_v13 = vrot.slane %v886_v8, 1  ;;  %v2258_v8 = vld [vmem:[%s2843_s7] sm:$0xff]  }
 0x207   : > { %v889_v14 = vrot.slane %v695_v7, 2  ;;  %v697_v16 = vrot.slane %v695_v7, 1  ;;  %v819_v26 = vsel %vm816_vm6, %v817_v23, %v818_v24  ;;  %v957_v30 = vsel %vm954_vm7, %v955_v28, %v956_v29  ;;  %v2257_v7 = vld [vmem:[%s2843_s7 + $0x8] sm:$0xff]   ;;  %v2262_v29 = vld [vmem:[%s2843_s7 + $0x30] sm:$0xff]  }
 0x208   : > { %v693_v15 = vor.u32 %v692_v10, %v688_v5  ;;  %v885_v18 = vor.u32 %v884_v12, %v883_v11  ;;  %v2261_v11 = vld [vmem:[%s2843_s7 + $0x10] sm:$0xff]  }
 0x209   : > { %2100 = vmatpush3.bf16.msra.mxu1 %v2252_v9  ;;  %v890_v19 = vor.u32 %v889_v14, %v888_v13  ;;  %v2259_v9 = vld [vmem:[%s2843_s7 + $0x18] sm:$0xff]  }
 0x20a   : > { %v698_v20 = vsel %vm686_vm4, %v693_v15, %v697_v16  ;;  %2113 = vmatprep.subr.bf16.mxu1 %v2385_v0 }
 0x20b   : > { %2078 = vmatmul.mubr.msk.bf16.vlgmr.msra.gmra.mxu0 %vm602_vm2, %v698_v20  ;;  %v891_v21 = vsel %vm882_vm5, %v885_v18, %v890_v19 }
 0x20c   : > { %2090 = vmatpush3.bf16.msra.mxu0 %v2253_v17  ;;  %2102 = vmatmul.mubr.msk.bf16.vlgmr.msra.gmra.mxu1 %vm602_vm2, %v891_v21 }
 0x20d   : > { %2091 = vmatprep.subr.bf16.mxu0 %v2385_v0  ;;  %2093 = vmatprep.mubr.msk.bf16.mxu0 %vm2386_vm0, %v2385_v0 }
 0x20e   : > { %2117 = vmatprep.mubr.msk.bf16.mxu1 %vm2386_vm0, %v2385_v0  ;;  %2114 = vmatpush3.bf16.msra.mxu1 %v2259_v9 }
 0x20f   : > { %2115 = vmatprep.subr.bf16.mxu1 %v2385_v0 }
 0x210   : > { %2092 = vmatpush3.bf16.msra.mxu0 %v2254_v22 }
 0x211   : > { %2105 = vmatprep.subr.bf16.mxu0 %v2385_v0 }
 0x212   : > { %2116 = vmatpush3.bf16.msra.mxu1 %v2261_v11 }
 0x213   : > { %2094 = vmatmul.mubr.msk.bf16.vlgmr.msra.gmra.mxu0 %vm602_vm2, %v819_v26  ;;  %2129 = vmatprep.subr.bf16.mxu1 %v2385_v0 }
 0x214   : > { %2106 = vmatpush3.bf16.msra.mxu0 %v2255_v25  ;;  %2109 = vmatprep.mubr.msk.bf16.mxu0 %vm2386_vm0, %v2385_v0 }
 0x215   : > { %2107 = vmatprep.subr.bf16.mxu0 %v2385_v0 }
 0x218   : > { %2108 = vmatpush3.bf16.msra.mxu0 %v2256_v27 }
 0x219   : > { %2121 = vmatprep.subr.bf16.mxu0 %v2385_v0 }
 0x21b   : > { %2110 = vmatmul.mubr.msk.bf16.vlgmr.msra.gmra.mxu0 %vm602_vm2, %v957_v30 }
 0x21c   : > { %2125 = vmatprep.mubr.msk.bf16.mxu0 %vm2386_vm0, %v2385_v0  ;;  %2122 = vmatpush3.bf16.msra.mxu0 %v2257_v7 }
 0x21d   : > { %2123 = vmatprep.subr.bf16.mxu0 %v2385_v0 }
 0x220   : > { %2124 = vmatpush3.bf16.msra.mxu0 %v2258_v8 }
 0x221   : > { %2137 = vmatprep.subr.bf16.mxu0 %v2385_v0 }
 0x2c4   : > { %v803_v31 = vpop.f32.mrf.mxu1 }
 0x2c6   : > { %v2087_v32 = vpop.f32.mrf.mxu1 }
 0x2c8   : > { %v806_v33 = vpop.f32.mrf.mxu1 }
 0x2ca   : > { %v2088_v34 = vpop.f32.mrf.mxu1 }
 0x2cb   : > { %v748_v35 = vpop.f32.mrf.mxu0 }
 0x2cc   : > { %v941_v36 = vpop.f32.mrf.mxu1  ;;  %v804_v44 = vadd.f32 %v803_v31, %v748_v35 }
 0x2cd   : > { %v2079_v37 = vpop.f32.mrf.mxu0 }
 0x2ce   : > { %v2103_v38 = vpop.f32.mrf.mxu1  ;;  %v2263_v37 = vld [vmem:[%s2843_s7 + $0x28] sm:$0xff]  }
 0x2cf   : > { %v751_v39 = vpop.f32.mrf.mxu0 }
 0x2d0   : > { %v944_v40 = vpop.f32.mrf.mxu1  ;;  %v807_v48 = vadd.f32 %v806_v33, %v751_v39 }
 0x2d1   : > { %v2080_v41 = vpop.f32.mrf.mxu0 }
 0x2d2   : > { %v2104_v42 = vpop.f32.mrf.mxu1 }
 0x2d3   : > { %v869_v43 = vpop.f32.mrf.mxu0  ;;  %v2264_v42 = vld [vmem:[%s2843_s7 + $0x20] sm:$0xff]  }
 0x2d4   : > { %v876_v46 = vadd.f32 %v869_v43, %v804_v44 }
 0x2d5   : > { %v2095_v45 = vpop.f32.mrf.mxu0 }
 0x2d6   : > { %v948_v51 = vadd.f32 %v941_v36, %v876_v46  ;;  %v2265_v45 = vld [vmem:[%s2843_s7 + $0x48] sm:$0xff]  }
 0x2d7   : > { %v872_v47 = vpop.f32.mrf.mxu0 }
 0x2d8   : > { %v877_v50 = vadd.f32 %v872_v47, %v807_v48  ;;  %v2266_v47 = vld [vmem:[%s2843_s7 + $0x40] sm:$0xff]  }
 0x2d9   : > { %v2096_v49 = vpop.f32.mrf.mxu0 }
 0x2da   : > { %v949_v58 = vadd.f32 %v944_v40, %v877_v50 }
 0x2db   : > { %v1007_v52 = vpop.f32.mrf.mxu0 }
 0x2dc   : > { %v1014_v54 = vadd.f32 %v1007_v52, %v948_v51 }
 0x2dd   : > { %v2111_v55 = vpop.f32.mrf.mxu0 }
 0x2de   : > { %v1023_v57 = vadd.f32 %v1959_v53, %v1014_v54 }
 0x2df   : > { %v1010_v59 = vpop.f32.mrf.mxu0 }
 0x2e0   : > { %v1960_v61 = vmul.f32 -1.442695, %v1023_v57  ;;  %v1015_v62 = vadd.f32 %v1010_v59, %v949_v58 }
 0x2e1   : > { %v2112_v63 = vpop.f32.mrf.mxu0 }
 0x2e2   : > { %2285 = vpow2.f32 %v1960_v61  ;;  %v1024_v1 = vadd.f32 %v1959_v53, %v1015_v62 }
 0x2e4   : > { %v1961_v2 = vmul.f32 -1.442695, %v1024_v1 }
 0x2e6   : > { %2287 = vpow2.f32 %v1961_v2 }
 0x2ef   : > { %v2286_v3 = vpop.eup %2285 }
 0x2f0   : > { %v1031_v4 = vadd.f32 1.0, %v2286_v3 }
 0x2f2   : > { %2289 = vrcp.f32 %v1031_v4 }
 0x2f3   : > { %v2288_v5 = vpop.eup %2287 }
 0x2f4   : > { %v1032_v6 = vadd.f32 1.0, %v2288_v5 }
 0x2f6   : > { %2291 = vrcp.f32 %v1032_v6 }
 0x2ff   : > { %v2290_v10 = vpop.eup %2289 }
 0x300   : > { %1039 = vrot.lane.b32.xlu0 %v2290_v10, %s2387_s30 }
 0x303   : > { %v2292_v12 = vpop.eup %2291 }
 0x304   : > { %1041 = vrot.lane.b32.xlu0 %v2292_v12, %s2387_s30  ;;  %v1977_v12 = vld [vmem:[%s2844_s8] ss:$0 sm:$0xff] }
 0x372   : > { %v1040_v13 = vpop.permute.xlu0 %1039 }
 0x373   : > { %v1045_v14 = vmul.f32 %v1040_v13, %v1023_v57 }
 0x375   : > { %v2649_v15 = vadd.f32 %v1045_v14, %v2575_v56  ;;  %v2260_v56 = vld [vmem:[%s2843_s7 + $0x38] sm:$0xff]  }
 0x376   : > { %v1042_v16 = vpop.permute.xlu0 %1041 }
 0x377   : > { %v1046_v17 = vmul.f32 %v1042_v16, %v1024_v1  ;;  %v1051_v18 = vrot.slane %v2649_v15, 6 }
 0x379   : > { %v2653_v19 = vadd.f32 %v1046_v17, %v2578_v60  ;;  %v1057_v21 = vsel %vm667_vm3, 0.0, %v1051_v18 }
 0x37b   : > { %v1052_v20 = vrot.slane %v2653_v19, 6 }
 0x37d   : > { %v1053_v22 = vsel %vm667_vm3, %v1051_v18, %v1052_v20  ;;  %v1058_v23 = vsel %vm667_vm3, %v1052_v20, 0.0 }
 0x37e   : > { %v1059_v24 = vpack.c.bf16 %v1053_v22, %v1057_v21  ;;  %v1060_v25 = vpack.c.bf16 %v1058_v23, %v1058_v23 }
 0x380   : > { %2126 = vmatmul.mubr.msk.bf16.vlgmr.msra.gmra.mxu0 %vm602_vm2, %v1059_v24  ;;  %v1070_v26 = vshrl.u32 %v1059_v24, 16  ;;  %v1072_v27 = vshll.u32 %v1059_v24, 16  ;;  %v1077_v60 = vshll.u32 %v1060_v25, 16  ;;  %v1266_v28 = vshrl.u32 %v1060_v25, 16 }
 0x381   : > { %2138 = vmatpush3.bf16.msra.mxu0 %v2260_v56  ;;  %2141 = vmatprep.mubr.msk.bf16.mxu0 %vm2386_vm0, %v2385_v0  ;;  %v1198_v43 = vrot.slane %v1059_v24, 1  ;;  %v1199_v44 = vrot.slane %v1060_v25, 1  ;;  %v1334_v48 = vrot.slane %v1059_v24, 2  ;;  %v1335_v49 = vrot.slane %v1060_v25, 2 }
 0x382   : > { %2139 = vmatprep.subr.bf16.mxu0 %v2385_v0  ;;  %v1074_v30 = vrot.slane %v1072_v27, 1  ;;  %v1263_v31 = vrot.slane %v1070_v26, 1  ;;  %v1264_v32 = vrot.slane %v1072_v27, 2  ;;  %v1268_v33 = vrot.slane %v1266_v28, 1  ;;  %v2268_v28 = vld [vmem:[%s2845_s9] sm:$0xff]  }
 0x383   : > { %v1269_v34 = vrot.slane %v1077_v60, 2  ;;  %v1079_v36 = vrot.slane %v1077_v60, 1  ;;  %v1200_v46 = vsel %vm816_vm6, %v1198_v43, %v1199_v44  ;;  %v1336_v50 = vsel %vm954_vm7, %v1334_v48, %v1335_v49  ;;  %v2267_v60 = vld [vmem:[%s2845_s9 + $0x8] sm:$0xff]  }
 0x384   : > { %v1075_v35 = vor.u32 %v1074_v30, %v1070_v26  ;;  %v1265_v38 = vor.u32 %v1264_v32, %v1263_v31 }
 0x385   : > { %2140 = vmatpush3.bf16.msra.mxu0 %v2262_v29  ;;  %v1270_v39 = vor.u32 %v1269_v34, %v1268_v33  ;;  %v1986_v33 = vld [vmem:[%s2848_s12] ss:$0 sm:$0xff] }
 0x386   : > { %v1080_v40 = vsel %vm686_vm4, %v1075_v35, %v1079_v36  ;;  %2153 = vmatprep.subr.bf16.mxu0 %v2385_v0 }
 0x387   : > { %2118 = vmatmul.mubr.msk.bf16.vlgmr.msra.gmra.mxu1 %vm602_vm2, %v1080_v40  ;;  %v1271_v41 = vsel %vm882_vm5, %v1265_v38, %v1270_v39 }
 0x388   : > { %2130 = vmatpush3.bf16.msra.mxu1 %v2263_v37  ;;  %2142 = vmatmul.mubr.msk.bf16.vlgmr.msra.gmra.mxu0 %vm602_vm2, %v1271_v41  ;;  %v1980_v41 = vld [vmem:[%s2846_s10] ss:$0 sm:$0xff] }
 0x389   : > { %2131 = vmatprep.subr.bf16.mxu1 %v2385_v0  ;;  %2133 = vmatprep.mubr.msk.bf16.mxu1 %vm2386_vm0, %v2385_v0 }
 0x38a   : > { %2157 = vmatprep.mubr.msk.bf16.mxu0 %vm2386_vm0, %v2385_v0  ;;  %2154 = vmatpush3.bf16.msra.mxu0 %v2267_v60 }
 0x38b   : > { %2155 = vmatprep.subr.bf16.mxu0 %v2385_v0 }
 0x38c   : > { %2132 = vmatpush3.bf16.msra.mxu1 %v2264_v42 }
 0x38d   : > { %2145 = vmatprep.subr.bf16.mxu1 %v2385_v0 }
 0x38e   : > { %2156 = vmatpush3.bf16.msra.mxu0 %v2268_v28 }
 0x38f   : > { %2134 = vmatmul.mubr.msk.bf16.vlgmr.msra.gmra.mxu1 %vm602_vm2, %v1200_v46 }
 0x390   : > { %2146 = vmatpush3.bf16.msra.mxu1 %v2265_v45  ;;  %2149 = vmatprep.mubr.msk.bf16.mxu1 %vm2386_vm0, %v2385_v0 }
 0x391   : > { %2147 = vmatprep.subr.bf16.mxu1 %v2385_v0 }
 0x394   : > { %2148 = vmatpush3.bf16.msra.mxu1 %v2266_v47 }
 0x397   : > { %2150 = vmatmul.mubr.msk.bf16.vlgmr.msra.gmra.mxu1 %vm602_vm2, %v1336_v50 }
 0x440   : > { %v1185_v51 = vpop.f32.mrf.mxu0 }
 0x442   : > { %v2127_v52 = vpop.f32.mrf.mxu0 }
 0x444   : > { %v1188_v53 = vpop.f32.mrf.mxu0 }
 0x446   : > { %v2128_v54 = vpop.f32.mrf.mxu0 }
 0x447   : > { %v1130_v55 = vpop.f32.mrf.mxu1 }
 0x448   : > { %v1321_v57 = vpop.f32.mrf.mxu0  ;;  %v1186_v3 = vadd.f32 %v1185_v51, %v1130_v55 }
 0x449   : > { %v2119_v58 = vpop.f32.mrf.mxu1 }
 0x44a   : > { %v2143_v59 = vpop.f32.mrf.mxu0 }
 0x44b   : > { %v1133_v61 = vpop.f32.mrf.mxu1 }
 0x44c   : > { %v1324_v62 = vpop.f32.mrf.mxu0  ;;  %v1189_v7 = vadd.f32 %v1188_v53, %v1133_v61 }
 0x44d   : > { %v2120_v63 = vpop.f32.mrf.mxu1 }
 0x44e   : > { %v2144_v1 = vpop.f32.mrf.mxu0 }
 0x44f   : > { %v1250_v2 = vpop.f32.mrf.mxu1 }
 0x450   : > { %v1257_v5 = vadd.f32 %v1250_v2, %v1186_v3 }
 0x451   : > { %v2135_v4 = vpop.f32.mrf.mxu1 }
 0x452   : > { %v1328_v10 = vadd.f32 %v1321_v57, %v1257_v5 }
 0x453   : > { %v1253_v6 = vpop.f32.mrf.mxu1 }
 0x454   : > { %v1258_v9 = vadd.f32 %v1253_v6, %v1189_v7 }
 0x455   : > { %v2136_v8 = vpop.f32.mrf.mxu1 }
 0x456   : > { %v1329_v17 = vadd.f32 %v1324_v62, %v1258_v9 }
 0x457   : > { %v1386_v11 = vpop.f32.mrf.mxu1 }
 0x458   : > { %v1393_v13 = vadd.f32 %v1386_v11, %v1328_v10 }
 0x459   : > { %v2151_v14 = vpop.f32.mrf.mxu1 }
 0x45a   : > { %v1402_v16 = vadd.f32 %v1977_v12, %v1393_v13 }
 0x45b   : > { %v1389_v18 = vpop.f32.mrf.mxu1 }
 0x45c   : > { %v1978_v20 = vmul.f32 -1.442695, %v1402_v16  ;;  %v1394_v21 = vadd.f32 %v1389_v18, %v1329_v17 }
 0x45d   : > { %v2152_v22 = vpop.f32.mrf.mxu1 }
 0x45e   : > { %2293 = vpow2.f32 %v1978_v20  ;;  %v1403_v23 = vadd.f32 %v1977_v12, %v1394_v21 }
 0x460   : > { %v1979_v56 = vmul.f32 -1.442695, %v1403_v23 }
 0x462   : > { %2295 = vpow2.f32 %v1979_v56 }
 0x46b   : > { %v2294_v24 = vpop.eup %2293 }
 0x46c   : > { %v1410_v25 = vadd.f32 1.0, %v2294_v24 }
 0x46e   : > { %2297 = vrcp.f32 %v1410_v25 }
 0x46f   : > { %v2296_v26 = vpop.eup %2295 }
 0x470   : > { %v1411_v27 = vadd.f32 1.0, %v2296_v26 }
 0x472   : > { %2299 = vrcp.f32 %v1411_v27 }
 0x47b   : > { %v2298_v29 = vpop.eup %2297 }
 0x47c   : > { %1418 = vrot.lane.b32.xlu1 %v2298_v29, %s2387_s30 }
 0x47f   : > { %v2300_v30 = vpop.eup %2299 }
 0x480   : > { %1420 = vrot.lane.b32.xlu1 %v2300_v30, %s2387_s30 }
 0x4ee   : > { %v1419_v31 = vpop.permute.xlu1 %1418 }
 0x4ef   : > { %v1424_v32 = vmul.f32 %v1419_v31, %v1402_v16 }
 0x4f1   : > { %v1426_v34 = vadd.f32 %v1424_v32, %v2649_v15 }
 0x4f2   : > { %v1421_v35 = vpop.permute.xlu1 %1420 }
 0x4f3   : > { %v1557_v36 = vadd.f32 %v1986_v33, %v1426_v34  ;;  %v1425_v37 = vmul.f32 %v1421_v35, %v1403_v23 }
 0x4f5   : > { %1559 = vst.msk [vmem:[#allocation5] sm:$0xff] %vm602_vm2, %v1557_v36  ;;  %v1427_v38 = vadd.f32 %v1425_v37, %v2653_v19 }
 0x4f7   : > { %v1428_v39 = vpack.c.bf16 %v1427_v38, %v1426_v34  ;;  %v1558_v40 = vadd.f32 %v1986_v33, %v1427_v38 }
 0x4f9   : > { %1560 = vst.msk [vmem:[#allocation5 + $0x8] sm:$0xff] %vm602_vm2, %v1558_v40  ;;  %2158 = vmatmul.mubr.msk.bf16.vlgmr.msra.gmra.mxu0 %vm602_vm2, %v1428_v39 }
 0x5b9   : > { %v1489_v42 = vpop.f32.mrf.mxu0 }
 0x5ba   : > { %v1490_v43 = vadd.f32 %v1980_v41, %v1489_v42 }
 0x5bb   : > { %v2159_v15 = vpop.f32.mrf.mxu0 }
 0x5bc   : > { %v2006_v44 = vpack.c.bf16 %v1490_v43, %v1490_v43 }
 0x5bd   : > { %v1492_v45 = vpop.f32.mrf.mxu0 }
 0x5be   : > { %1505 = vst.msk [vmem:[#allocation2] sm:$0xf] %vm1504_vm8, %v2006_v44  ;;  %v1493_v46 = vadd.f32 %v1980_v41, %v1492_v45  ;;  %1507 = vrot.lane.b32.xlu0 %v2006_v44, %s2387_s30 }
 0x5bf   : > { %v2160_v19 = vpop.f32.mrf.mxu0 }
 0x5c0   : > { %v2007_v47 = vpack.c.bf16 %v1493_v46, %v1493_v46 }
 0x5c2   : > { %1506 = vst.msk [vmem:[#allocation2 + $0x4] sm:$0xf] %vm1504_vm8, %v2007_v47  ;;  %1515 = vrot.lane.b32.xlu0 %v2006_v44, %s2388_s26  ;;  %1509 = vrot.lane.b32.xlu1 %v2007_v47, %s2387_s30  ;;  %s2863_s30 = sand.u32 1, %s2371_s19  }
 0x5c3   : > { %s2738_s25 = scalar_lea.vmem [#allocation6], %s2863_s30 }
 0x5c6   : > { %1523 = vrot.lane.b32.xlu0 %v2006_v44, %s2389_s16  ;;  %1517 = vrot.lane.b32.xlu1 %v2007_v47, %s2388_s26 }
 0x5ca   : > { %1532 = vrot.lane.b32.xlu0 %v2006_v44, %s2390_s17  ;;  %1525 = vrot.lane.b32.xlu1 %v2007_v47, %s2389_s16 }
 0x5ce   : > { %1541 = vrot.lane.b32.xlu0 %v2006_v44, %s2391_s23  ;;  %1534 = vrot.lane.b32.xlu1 %v2007_v47, %s2390_s17 }
 0x5d2   : > { %1543 = vrot.lane.b32.xlu1 %v2007_v47, %s2391_s23 }
 0x630   : > { %v1508_v48 = vpop.permute.xlu0 %1507 }
 0x631   : > { %1513 = vst.msk [vmem:[#allocation3] sm:$0xf] %vm1504_vm8, %v1508_v48 }
 0x634   : > { %v1516_v49 = vpop.permute.xlu0 %1515  ;;  %v1510_v50 = vpop.permute.xlu1 %1509 }
 0x635   : > { %1521 = vst.msk [vmem:[#allocation4] sm:$0xf] %vm1504_vm8, %v1516_v49  ;;  %1514 = vst.msk [vmem:[#allocation3 + $0x4] sm:$0xf] %vm1504_vm8, %v1510_v50 }
 0x638   : > { %v1524_v51 = vpop.permute.xlu0 %1523  ;;  %v1518_v52 = vpop.permute.xlu1 %1517 }
 0x639   : > { %1530 = vst.msk [vmem:[#allocation2 + $0x8] sm:$0xf] %vm1504_vm8, %v1524_v51  ;;  %1522 = vst.msk [vmem:[#allocation4 + $0x4] sm:$0xf] %vm1504_vm8, %v1518_v52 }
 0x63c   : > { %v1533_v53 = vpop.permute.xlu0 %1532  ;;  %v1526_v54 = vpop.permute.xlu1 %1525 }
 0x63d   : > { %1539 = vst.msk [vmem:[#allocation3 + $0x8] sm:$0xf] %vm1504_vm8, %v1533_v53  ;;  %1531 = vst.msk [vmem:[#allocation2 + $0xc] sm:$0xf] %vm1504_vm8, %v1526_v54 }
 0x640   : > { %v1542_v55 = vpop.permute.xlu0 %1541  ;;  %v1535_v57 = vpop.permute.xlu1 %1534 }
 0x641   : > { %1548 = vst.msk [vmem:[#allocation4 + $0x8] sm:$0xf] %vm1504_vm8, %v1542_v55  ;;  %1540 = vst.msk [vmem:[#allocation3 + $0xc] sm:$0xf] %vm1504_vm8, %v1535_v57 }
 0x644   : > { %v1544_v58 = vpop.permute.xlu1 %1543 }
 0x645   : > { %1549 = vst.msk [vmem:[#allocation4 + $0xc] sm:$0xf] %vm1504_vm8, %v1544_v58 }
 0x646 LB: >> { %v2392_v59 = vmov 0.0   ;;  %vm2393_vm9 = vmmov 0   ;;  %s2747_s27 = sshll.u32 %s2383_s1, 3  ;;  %v1715_v31 = vld [vmem:[#allocation5] sm:$0xff]  ;;  %v1716_v35 = vld [vmem:[#allocation5 + $0x8] sm:$0xff]  ;;  %s1566_s1 = sadd.s32 1, %s2383_s1   ;;  %s2383_s1 = sphi %s2740_s1, %s1566_s1  }
 0x647   : >> { %2161 = vmatprep.subr.bf16.mxu0 %v2392_v59  ;;  %2163 = vmatprep.mubr.msk.bf16.mxu0 %vm2393_vm9, %v2392_v59  ;;  %s1569_s26 = scalar_lea.vmem [#allocation3], %s2747_s27  ;;  %s1582_s16 = scalar_lea.vmem [#allocation2], %s2747_s27 }
 0x648   : >> { %2167 = vmatprep.subr.bf16.mxu1 %v2392_v59  ;;  %2169 = vmatprep.mubr.msk.bf16.mxu1 %vm2393_vm9, %v2392_v59  ;;  %v2301_v61 = vld [vmem:[%s1569_s26] sm:$0xff]   ;;  %s1573_s17 = scalar_lea.vmem [#allocation4], %s2747_s27  ;;  %s1577_s26 = scalar_lea.vmem %s2847_s11, %s2747_s27 }
 0x649   : >> { %v1599_v62 = vsel %vm515_vm1, %v2301_v61, 0  ;;  %v2302_v63 = vld [vmem:[%s1582_s16] sm:$0xff]   ;;  %p1563_p11 = scmp.ge.s32.totalorder %s1566_s1, 2  }
 0x64a   : >> { %2162 = vmatpush3.bf16.xpose.msra.mxu0 %v1599_v62  ;;  %v2304_v25 = vld [vmem:[%s1577_s26] sm:$0xff]   ;;  %v2313_v39 = vld [vmem:[%s2849_s13 + $0x8] sm:$0xff] (%p1563_p11)   ;;  %s2002_s26 = sshll.u32 (%p1563_p11), %s2496_s22, 4  ;;  %s1861_s27 = sshll.u32 (%p1563_p11), %s2738_s25, 4  ;;  %vm1846_vm10 = vcmask (%p1563_p11), 516096   ;;  %s2794_s27 = int_to_ptr.vmem [resolvable:$true] %s1861_s27 }
 0x64b   : > { %2179 = vmatprep.subr.bf16.mxu0 (%p1563_p11), %v2385_v0  ;;  %v2314_v40 = vld [vmem:[%s2849_s13] sm:$0xff] (%p1563_p11)   ;;  %s2792_s23 = scalar_lea.hbm (%p1563_p11), %s2851_s15, %s2002_s26  ;;  %s2864_s1 = sand.u32 (%p1563_p11), 1, %s2371_s19  }
 0x64c   : >> { %v2303_v18 = vld [vmem:[%s1573_s17] sm:$0xff]   ;;  %s1849_s30 = scalar_lea.sflag (%p1563_p11), [#allocation7], %s2864_s1  ;;  %s2315_s22 = scalar_lea.vmem (%p1563_p11), %s2794_s27, 16 }
 0x64d   : >> { %2168 = vmatpush3.bf16.msra.mxu1 %v2303_v18  ;;  %p2316_p12 = scmp.ne.s32.totalorder (%p1563_p11), %s2794_s27, %s2315_s22  ;;  %s2394_s0 = smov (%p1563_p11), [#allocation6]  }
 0x64e   : >> { %2173 = vmatprep.subr.bf16.mxu1 %v2392_v59  ;;  %s2319_s2 = sshll.u32 (%p1563_p11), %s2394_s0, 4  ;;  %s2320_s2 = int_to_ptr.vmem [resolvable:$false] %s2319_s2 }
 0x64f   : > { %p2317_p13 = pnand (%p1563_p11), %p2316_p12, %p2513_p5  ;;  %s2321_s26 = scalar_lea.vmem (%p1563_p11), %s2320_s2, 32 }
 0x650   : > { %p2322_p1 = scmp.lt.s32.totalorder (%p1563_p11), %s2794_s27, %s2320_s2  ;;  %p2323_p2 = scmp.lt.s32.totalorder (%p1563_p11), %s2321_s26, %s2315_s22 }
 0x651   : >> { %2164 = vmatmul.mubr.msk.bf16.vlgmr.msra.gmra.mxu0 %vm515_vm1, %v2302_v63  ;;  %p2318_p0 = pneg (%p1563_p11), %p2317_p13 }
 0x652   : > { %2183 = vmatprep.mubr.msk.bf16.mxu0 (%p1563_p11), %vm2386_vm0, %v2385_v0  ;;  %2180 = vmatpush3.bf16.msra.mxu0 (%p1563_p11), %v2313_v39  ;;  %p2324_p3 = por (%p1563_p11), %p2323_p2, %p2322_p1 }
 0x653   : > { %2181 = vmatprep.subr.bf16.mxu0 (%p1563_p11), %v2385_v0  ;;  %v1790_v0 = vld [vmem:[%s2850_s14] sm:$0x1] (%p1563_p11) }
 0x654   : > { %p2325_p4 = pnand (%p1563_p11), %p2324_p3, %p2318_p0 }
 0x656   : > { %2182 = vmatpush3.bf16.msra.mxu0 (%p1563_p11), %v2314_v40 }
 0x711   : >> { %v1635_v1 = vpop.f32.mrf.mxu0 }
 0x712   : >> { %v1642_v2 = vsel %vm515_vm1, %v1635_v1, -inf }
 0x713   : >> { %1643 = vmax.xlane.f32.xlu0 %v1642_v2  ;;  %v2165_v3 = vpop.f32.mrf.mxu0 }
 0x715   : >> { %v1638_v4 = vpop.f32.mrf.mxu0 }
 0x716   : >> { %v1645_v5 = vsel %vm515_vm1, %v1638_v4, -inf }
 0x717   : >> { %1646 = vmax.xlane.f32.xlu0 %v1645_v5  ;;  %v2166_v6 = vpop.f32.mrf.mxu0 }
 0x79c   : >> { %v1644_v7 = vpop.xlane.xlu0 %1643 }
 0x79d   : >> { %v1648_v8 = vsub.f32 %v1635_v1, %v1644_v7 }
 0x79f   : >> { %v1650_v9 = vmul.f32 1.442695, %v1648_v8 }
 0x7a0   : >> { %v1647_v10 = vpop.xlane.xlu0 %1646 }
 0x7a1   : >> { %2305 = vpow2.f32 %v1650_v9  ;;  %v1649_v11 = vsub.f32 %v1638_v4, %v1647_v10 }
 0x7a3   : >> { %v1652_v12 = vmul.f32 1.442695, %v1649_v11 }
 0x7a5   : >> { %2307 = vpow2.f32 %v1652_v12 }
 0x7ae   : >> { %v2306_v13 = vpop.eup %2305 }
 0x7af   : >> { %v1654_v14 = vsel %vm515_vm1, %v2306_v13, 0.0 }
 0x7b0   : >> { %1655 = vadd.xlane.f32.xlu1 %v1654_v14 }
 0x7b2   : >> { %v2308_v16 = vpop.eup %2307 }
 0x7b3   : >> { %v1657_v17 = vsel %vm515_vm1, %v2308_v16, 0.0 }
 0x7b4   : >> { %1658 = vadd.xlane.f32.xlu1 %v1657_v17 }
 0x839   : >> { %v1656_v20 = vpop.xlane.xlu1 %1655 }
 0x83a   : >> { %2309 = vrcp.f32 %v1656_v20 }
 0x83d   : >> { %v1659_v21 = vpop.xlane.xlu1 %1658 }
 0x83e   : >> { %2311 = vrcp.f32 %v1659_v21 }
 0x847   : >> { %v2310_v22 = vpop.eup %2309 }
 0x848   : >> { %v1662_v56 = vmul.f32 %v2310_v22, %v2306_v13 }
 0x84b   : >> { %v2312_v23 = vpop.eup %2311 }
 0x84c   : >> { %v1663_v24 = vmul.f32 %v2312_v23, %v2308_v16 }
 0x84e   : >> { %v1664_v26 = vpack.c.bf16 %v1663_v24, %v1662_v56 }
 0x850   : >> { %2170 = vmatmul.mubr.msk.bf16.vlgmr.msra.gmra.mxu1 %vm515_vm1, %v1664_v26 }
 0x851   : >> { %2174 = vmatpush3.bf16.msra.mxu1 %v2304_v25  ;;  %2175 = vmatprep.mubr.msk.bf16.mxu1 %vm2393_vm9, %v2392_v59 }
 0x910   : >> { %v1708_v27 = vpop.f32.mrf.mxu1 }
 0x912   : >> { %v2171_v60 = vpop.f32.mrf.mxu1 }
 0x914   : >> { %v1711_v28 = vpop.f32.mrf.mxu1 }
 0x915   : >> { %v1717_v29 = vpack.c.bf16 %v1711_v28, %v1708_v27 }
 0x916   : >> { %v2172_v30 = vpop.f32.mrf.mxu1 }
 0x917   : >> { %2176 = vmatmul.mubr.msk.bf16.vlgmr.msra.gmra.mxu1 %vm515_vm1, %v1717_v29 }
 0x9d7   : >> { %v1761_v32 = vpop.f32.mrf.mxu1 }
 0x9d8   : >> { %v1768_v33 = vadd.f32 %v1761_v32, %v1715_v31 }
 0x9d9   : >> { %v2177_v34 = vpop.f32.mrf.mxu1 }
 0x9da   : >> { %1770 = vst.msk [vmem:[#allocation5] sm:$0xff] %vm602_vm2, %v1768_v33 }
 0x9db   : >> { %v1764_v36 = vpop.f32.mrf.mxu1 }
 0x9dc   : >> { %v1769_v37 = vadd.f32 %v1764_v36, %v1716_v35 }
 0x9dd   : >> { %v2178_v38 = vpop.f32.mrf.mxu1 }
 0x9de   : >> { %1771 = vst.msk [vmem:[#allocation5 + $0x8] sm:$0xff] %vm602_vm2, %v1769_v37 }
 0x9df   : > { %1565 = sbr.rel (!%p1563_p11) target bundleno = 1606 (0x646), region = 129 }
 0x9e1   : > { %v1772_v41 = vld [vmem:[#allocation5] sm:$0xff] (%p1563_p11) }
 0x9e2   : > { %v1774_v43 = vsel (%p1563_p11), %vm602_vm2, %v1772_v41, 0.0 }
 0x9e5   : > { %v1773_v42 = vld [vmem:[#allocation5 + $0x8] sm:$0xff] }
 0x9e6   : > { %v1775_v15 = vsel %vm602_vm2, %v1773_v42, 0.0 }
 0x9e7   : > { %v1776_v44 = vadd.f32 %v1775_v15, %v1774_v43 }
 0x9e9   : > { %v1777_v45 = vrot.slane %v1776_v44, 4 }
 0x9eb   : > { %v1778_v46 = vadd.f32 %v1777_v45, %v1776_v44 }
 0x9ed   : > { %v1779_v19 = vrot.slane %v1778_v46, 2 }
 0x9ef   : > { %v1780_v47 = vadd.f32 %v1779_v19, %v1778_v46 }
 0x9f1   : > { %v1781_v48 = vrot.slane %v1780_v47, 1 }
 0x9f3   : > { %v1782_v49 = vadd.f32 %v1781_v48, %v1780_v47 }
 0x9f5   : > { %v1784_v50 = vmul.f32 0.0625, %v1782_v49 }
 0x9f7   : > { %v1785_v51 = vpack.c.bf16 %v1784_v50, %v1784_v50 }
 0x9f9   : > { %2184 = vmatmul.mubr.msk.bf16.vlgmr.msra.gmra.mxu0 %vm602_vm2, %v1785_v51 }
 0xab9   : > { %v1840_v52 = vpop.f32.mrf.mxu0 }
 0xaba   : > { %v1841_v53 = vadd.f32 %v1840_v52, %v1790_v0 }
 0xabb   : > { %v2185_v54 = vpop.f32.mrf.mxu0 }
 0xabc   : > { %1847 = vst.msk [vmem:[%s2738_s25] sm:$0x1] %vm1846_vm10, %v1841_v53 }
 0xabd   : > { %v1843_v55 = vpop.f32.mrf.mxu0 }
 0xabe   : > { %2328 = shalt.err (!%p2325_p4)
}
 0xabf   : > { %s2329_s25 = scalar_lea.hbm %s2792_s23, 16  ;;  %s2333_s0 = scalar_lea.hbm %s2851_s15, 32 }
 0xac0   : > { %p2330_p7 = scmp.ne.s32.totalorder %s2792_s23, %s2329_s25  ;;  %p2334_p10 = scmp.lt.s32.totalorder %s2792_s23, %s2851_s15 }
 0xac1   : > { %p2335_p11 = scmp.lt.s32.totalorder %s2333_s0, %s2329_s25 }
 0xac2   : > { %p2331_p8 = pnand %p2330_p7, %p2513_p5 }
 0xac3   : > { %p2336_p12 = por %p2335_p11, %p2334_p10 }
 0xac4   : > { %p2332_p9 = pneg %p2331_p8 }
 0xac6   : > { %p2337_p13 = pnand %p2336_p12, %p2332_p9 }
 0xac8   : > { %2340 = shalt.err (!%p2337_p13)
}
 0xac9   : > { %2187 = dma.vmem_to_hbm [thread:$0]  (%p2513_p5), %s2794_s27, 16, %s2792_s23, %s1849_s30   ;;  %v2186_v57 = vpop.f32.mrf.mxu0 }
 0xaca PF: > { %p2193_p0 = scmp.ge.s32.totalorder %s2379_s21, 2  ;;  %s1873_s2 = sand.u32 1, %s2367_s18  }
 0xacb   : > { %s1874_s3 = scalar_lea.sflag [#allocation7], %s1873_s2 }
 0xacc   : > { %p2190_p1 = pnand %p2193_p0, %p2517_p6 }
 0xace   : > { %p2191_p2 = pneg %p2190_p1 }
 0xad0   : > { %2362 = dma.done.wait (%p2191_p2), %s1874_s3, 16  }
 0xad1   : > { %2364 = vsyncadd (%p2191_p2), %s1874_s3, 4294967280  ;;  %s2865_s28 = sld [smem:[#allocation9_spill]]  ;;  %p25_p3 = scmp.ge.s32.totalorder %s2500_s24, 4  }
 0xad2   : > { %s2866_s18 = smov %s2371_s19  ;;  %s2867_s19 = smov %s2375_s20 }
 0xad3   : > { %s2869_s21 = smov %s2500_s24  ;;  %27 = sbr.rel (!%p25_p3) target bundleno = 8 (0x8), region = 140 }
 0xad7   : > { %s2868_s20 = smov %s2865_s28 }
 0xad8   :  { %1878 = vsyncpa [#allocation7], 1 }
 0xad9   :  { %1880 = vsyncpa [#allocation7 + $0x1], 1 }

</bundles_post_ra>
